<compile_context>
chip_gen: v7x
topology: tpu7x:2x2x1
jax: 0.10.0
libtpu: 0.0.40
codegen_flags: <defaults>
</compile_context>

<pallas_src>
import jax
import jax.numpy as jnp
from jax.experimental import pallas as pl
from jax.experimental.pallas import tpu as pltpu

BN_EPS = 1e-5


def domain_classifier_kernel(
    b3_ref,    # SMEM (1,1) f32   : final-layer bias
    x_ref,     # VMEM (B,128) f32
    w1_ref,    # VMEM (128,1024) bf16
    gb1_ref,   # VMEM (2,1024) f32 : [gamma1; beta1]
    w2_hbm,    # ANY  (1024,256) bf16 : stays in HBM, copied manually
    gb2_ref,   # VMEM (2,256) f32  : [gamma2; beta2]
    w3_ref,    # VMEM (1,256) f32  : final-layer weight row
    o_ref,     # VMEM (B,1) f32
    w2_vmem,   # scratch VMEM (1024,256) bf16
    w2_sem,    # scratch DMA semaphore
):
    # Kick off the w2 HBM->VMEM copy immediately; it runs behind layer-1
    # compute and we only wait for it right before the second matmul.
    w2_copy = pltpu.make_async_copy(w2_hbm, w2_vmem, w2_sem)
    w2_copy.start()

    inv_b = 1.0 / x_ref.shape[0]

    # ---- Linear(128,1024) [bias cancelled by BN] + BatchNorm1d + ReLU ----
    h = jnp.dot(x_ref[...].astype(jnp.bfloat16), w1_ref[...],
                preferred_element_type=jnp.float32)
    mu = jnp.sum(h, axis=0, keepdims=True) * inv_b
    ex2 = jnp.sum(h * h, axis=0, keepdims=True) * inv_b
    var = jnp.maximum(ex2 - mu * mu, 0.0)              # clamp f32 cancellation
    scale = gb1_ref[0:1, :] * jax.lax.rsqrt(var + BN_EPS)
    shift = gb1_ref[1:2, :] - mu * scale
    h = jnp.maximum(h * scale + shift, 0.0)

    # w2 must be resident now.
    w2_copy.wait()

    # ---- Linear(1024,256) [bias cancelled by BN] + BatchNorm1d + ReLU ----
    h = jnp.dot(h.astype(jnp.bfloat16), w2_vmem[...],
                preferred_element_type=jnp.float32)
    mu = jnp.sum(h, axis=0, keepdims=True) * inv_b
    ex2 = jnp.sum(h * h, axis=0, keepdims=True) * inv_b
    var = jnp.maximum(ex2 - mu * mu, 0.0)
    scale = gb2_ref[0:1, :] * jax.lax.rsqrt(var + BN_EPS)
    shift = gb2_ref[1:2, :] - mu * scale
    h = jnp.maximum(h * scale + shift, 0.0)

    # ---- Linear(256,1): VPU multiply + lane reduction (skip N=1 MXU pass) ----
    out = jnp.sum(h * w3_ref[...], axis=-1, keepdims=True) + b3_ref[0, 0]
    o_ref[...] = out.astype(o_ref.dtype)


def _vmem_limit_bytes(batch):
    """Request roughly what the kernel needs, clamped to 75% of device VMEM."""
    weight_bytes = (128 * 1024 * 2) + (1024 * 256 * 2) + (2 * 1024 * 4) \
                   + (2 * 256 * 4) + (256 * 4)
    # h1 f32 + h1 bf16 + h*h temp + h2 f32 + h2 bf16 + x f32/bf16
    per_row = 1024 * (4 + 2 + 4) + 256 * (4 + 2) + 128 * (4 + 2)
    needed = weight_bytes + batch * per_row
    try:
        cap = int(pltpu.get_tpu_info().vmem_capacity_bytes)
    except Exception:  # pragma: no cover - conservative fallback
        cap = 64 * 1024 * 1024
    return int(min(cap * 3 // 4, max(8 * 1024 * 1024, 2 * needed)))


def domain_classifier(x, params, lambda_=1.0):
    """Forward pass of DomainClassifier. lambda_ only affects the backward pass
    (gradient reversal); the forward is an identity in that layer."""
    del lambda_
    B = x.shape[0]
    vmem = pl.BlockSpec(memory_space=pltpu.MemorySpace.VMEM)
    smem = pl.BlockSpec(memory_space=pltpu.MemorySpace.SMEM)
    hbm = pl.BlockSpec(memory_space=pl.ANY)

    flops = 2 * B * (128 * 1024 + 1024 * 256) + 2 * B * 256
    bytes_accessed = (128 * 1024 * 2) + (1024 * 256 * 2) + (2 * 1024 * 4) \
                     + (2 * 256 * 4) + (256 * 4) + B * (128 * 4 + 4)

    return pl.pallas_call(
        domain_classifier_kernel,
        out_shape=jax.ShapeDtypeStruct((B, 1), jnp.float32),
        in_specs=[smem, vmem, vmem, vmem, hbm, vmem, vmem],
        out_specs=vmem,
        scratch_shapes=[
            pltpu.VMEM((1024, 256), jnp.bfloat16),   # w2 landing buffer
            pltpu.SemaphoreType.DMA(()),             # w2 copy completion
        ],
        compiler_params=pltpu.CompilerParams(
            vmem_limit_bytes=_vmem_limit_bytes(B)),
        cost_estimate=pl.CostEstimate(
            flops=flops, transcendentals=1024 + 256,
            bytes_accessed=bytes_accessed),
    )(params["b3"], x, params["w1"], params["gb1"],
      params["w2"], params["gb2"], params["w3"])


def init_params(key):
    """Deterministic synthetic parameters, PyTorch-style uniform(+-1/sqrt(fan_in))."""
    ks = jax.random.split(key, 10)

    def lin(kw, kb, fan_in, fan_out, w_dtype):
        bound = float(fan_in) ** -0.5
        w = jax.random.uniform(kw, (fan_in, fan_out), jnp.float32, -bound, bound)
        b = jax.random.uniform(kb, (1, fan_out), jnp.float32, -bound, bound)
        return w.astype(w_dtype), b

    w1, b1 = lin(ks[0], ks[1], 128, 1024, jnp.bfloat16)
    w2, b2 = lin(ks[2], ks[3], 1024, 256, jnp.bfloat16)
    w3, b3 = lin(ks[4], ks[5], 256, 1, jnp.float32)      # (256,1), (1,1)

    def affine(kg, kb2, n):
        g = jax.random.uniform(kg, (1, n), jnp.float32, 0.5, 1.5)
        b = jax.random.uniform(kb2, (1, n), jnp.float32, -0.1, 0.1)
        return jnp.concatenate([g, b], axis=0)           # (2, n): [gamma; beta]

    return {
        "w1": w1, "b1": b1, "gb1": affine(ks[6], ks[7], 1024),
        "w2": w2, "b2": b2, "gb2": affine(ks[8], ks[9], 256),
        "w3": w3.T,   # (1,256) lane-dense row for the VPU reduction
        "b3": b3,     # (1,1) scalar
    }


def reference_forward(x, p):
    """Pure-JAX reference with PyTorch-module semantics (Linear -> BN(train) ->
    ReLU) at the same bf16 matmul-operand precision as the kernel.  The pre-BN
    biases b1/b2 are kept here to demonstrate they are cancelled exactly.
    NOTE: bf16 weights are an intentional approximation vs the f32 PyTorch
    module; this test measures kernel-vs-JAX agreement at matched precision."""
    def bn(h, gb):
        mu = h.mean(0, keepdims=True)
        var = ((h - mu) ** 2).mean(0, keepdims=True)     # biased variance
        return (h - mu) * jax.lax.rsqrt(var + BN_EPS) * gb[0:1] + gb[1:2]

    h = jnp.dot(x.astype(jnp.bfloat16), p["w1"],
                preferred_element_type=jnp.float32) + p["b1"]
    h = jnp.maximum(bn(h, p["gb1"]), 0.0)
    h = jnp.dot(h.astype(jnp.bfloat16), p["w2"],
                preferred_element_type=jnp.float32) + p["b2"]
    h = jnp.maximum(bn(h, p["gb2"]), 0.0)
    return jnp.dot(h, p["w3"].T) + p["b3"]


if __name__ == "__main__":
    key = jax.random.PRNGKey(0)
    k_x, k_p = jax.random.split(key)

    B = 16  # multiple of 16 (packed bf16 sublanes); BN train mode needs B > 1
    x = jax.random.normal(k_x, (B, 128), jnp.float32)
    params = init_params(k_p)

    out = jax.block_until_ready(domain_classifier(x, params, lambda_=0.5))
    ref = reference_forward(x, params)

    assert out.shape == (B, 1)
    assert jnp.allclose(out, ref, atol=5e-3, rtol=5e-3), (
        f"max abs diff = {jnp.max(jnp.abs(out - ref))}"
    )

    print("KERNEL_OK")
</pallas_src>

<mosaic_0001>
module attributes {stable_mosaic.version = 11 : i64} {
  func.func @domain_classifier_kernel(%arg0: memref<1x1xf32, #tpu.memory_space<smem>>, %arg1: memref<16x128xf32, #tpu.memory_space<vmem>>, %arg2: memref<128x1024xbf16, #tpu.memory_space<vmem>>, %arg3: memref<2x1024xf32, #tpu.memory_space<vmem>>, %arg4: memref<1024x256xbf16, #tpu.memory_space<any>>, %arg5: memref<2x256xf32, #tpu.memory_space<vmem>>, %arg6: memref<1x256xf32, #tpu.memory_space<vmem>>, %arg7: memref<16x1xf32, #tpu.memory_space<vmem>>, %arg8: memref<1024x256xbf16, #tpu.memory_space<vmem>>, %arg9: memref<!tpu.dma_semaphore, #tpu.memory_space<semaphore_mem>>) attributes {dimension_semantics = [], scalar_prefetch = 0 : i64, scratch_operands = 2 : i64, tpu.core_type = #tpu.core_type<tc>} {
    tpu.enqueue_dma source(%arg4 : memref<1024x256xbf16, #tpu.memory_space<any>>) target(%arg8 : memref<1024x256xbf16, #tpu.memory_space<vmem>>) target_semaphore(%arg9 : memref<!tpu.dma_semaphore, #tpu.memory_space<semaphore_mem>>)
    %c0 = arith.constant 0 : index
    %c0_0 = arith.constant 0 : index
    %0 = vector.load %arg1[%c0, %c0_0] : memref<16x128xf32, #tpu.memory_space<vmem>>, vector<16x128xf32>
    %1 = arith.truncf %0 : vector<16x128xf32> to vector<16x128xbf16>
    %c0_1 = arith.constant 0 : index
    %c0_2 = arith.constant 0 : index
    %2 = vector.load %arg2[%c0_1, %c0_2] : memref<128x1024xbf16, #tpu.memory_space<vmem>>, vector<128x1024xbf16>
    %cst = arith.constant dense<0.000000e+00> : vector<16x1024xf32>
    %3 = tpu.matmul %1, %2, %cst {dimension_numbers = #tpu.dot_dimension_numbers<[1], [0], [0], [1], [0, 0, 1, 1], [], []>} : vector<16x128xbf16>, vector<128x1024xbf16>, vector<16x1024xf32> -> vector<16x1024xf32>
    %cst_3 = arith.constant dense<0.000000e+00> : vector<1024xf32>
    %4 = vector.multi_reduction <add>, %3, %cst_3 [0] : vector<16x1024xf32> to vector<1024xf32>
    %5 = vector.shape_cast %4 : vector<1024xf32> to vector<1x1024xf32>
    %cst_4 = arith.constant 6.250000e-02 : f32
    %6 = vector.broadcast %cst_4 : f32 to vector<1x1024xf32>
    %7 = arith.mulf %5, %6 : vector<1x1024xf32>
    %8 = arith.mulf %3, %3 : vector<16x1024xf32>
    %cst_5 = arith.constant dense<0.000000e+00> : vector<1024xf32>
    %9 = vector.multi_reduction <add>, %8, %cst_5 [0] : vector<16x1024xf32> to vector<1024xf32>
    %10 = vector.shape_cast %9 : vector<1024xf32> to vector<1x1024xf32>
    %cst_6 = arith.constant 6.250000e-02 : f32
    %11 = vector.broadcast %cst_6 : f32 to vector<1x1024xf32>
    %12 = arith.mulf %10, %11 : vector<1x1024xf32>
    %13 = arith.mulf %7, %7 : vector<1x1024xf32>
    %14 = arith.subf %12, %13 : vector<1x1024xf32>
    %cst_7 = arith.constant 0.000000e+00 : f32
    %15 = vector.broadcast %cst_7 : f32 to vector<1x1024xf32>
    %16 = arith.maximumf %14, %15 : vector<1x1024xf32>
    %c0_8 = arith.constant 0 : index
    %c0_9 = arith.constant 0 : index
    %17 = vector.load %arg3[%c0_8, %c0_9] : memref<2x1024xf32, #tpu.memory_space<vmem>>, vector<1x1024xf32>
    %cst_10 = arith.constant 9.99999974E-6 : f32
    %18 = vector.broadcast %cst_10 : f32 to vector<1x1024xf32>
    %19 = arith.addf %16, %18 : vector<1x1024xf32>
    %20 = math.rsqrt %19 : vector<1x1024xf32>
    %21 = arith.mulf %17, %20 : vector<1x1024xf32>
    %c1 = arith.constant 1 : index
    %c0_11 = arith.constant 0 : index
    %22 = vector.load %arg3[%c1, %c0_11] : memref<2x1024xf32, #tpu.memory_space<vmem>>, vector<1x1024xf32>
    %23 = arith.mulf %7, %21 : vector<1x1024xf32>
    %24 = arith.subf %22, %23 : vector<1x1024xf32>
    %25 = vector.broadcast %21 : vector<1x1024xf32> to vector<16x1024xf32>
    %26 = arith.mulf %3, %25 : vector<16x1024xf32>
    %27 = vector.broadcast %24 : vector<1x1024xf32> to vector<16x1024xf32>
    %28 = arith.addf %26, %27 : vector<16x1024xf32>
    %cst_12 = arith.constant 0.000000e+00 : f32
    %29 = vector.broadcast %cst_12 : f32 to vector<16x1024xf32>
    %30 = arith.maximumf %28, %29 : vector<16x1024xf32>
    tpu.wait_dma2 semaphore(%arg9 : memref<!tpu.dma_semaphore, #tpu.memory_space<semaphore_mem>>) src(%arg4 : memref<1024x256xbf16, #tpu.memory_space<any>>) dst(%arg8 : memref<1024x256xbf16, #tpu.memory_space<vmem>>)
    %31 = arith.truncf %30 : vector<16x1024xf32> to vector<16x1024xbf16>
    %c0_13 = arith.constant 0 : index
    %c0_14 = arith.constant 0 : index
    %32 = vector.load %arg8[%c0_13, %c0_14] : memref<1024x256xbf16, #tpu.memory_space<vmem>>, vector<1024x256xbf16>
    %cst_15 = arith.constant dense<0.000000e+00> : vector<16x256xf32>
    %33 = tpu.matmul %31, %32, %cst_15 {dimension_numbers = #tpu.dot_dimension_numbers<[1], [0], [0], [1], [0, 0, 1, 1], [], []>} : vector<16x1024xbf16>, vector<1024x256xbf16>, vector<16x256xf32> -> vector<16x256xf32>
    %cst_16 = arith.constant dense<0.000000e+00> : vector<256xf32>
    %34 = vector.multi_reduction <add>, %33, %cst_16 [0] : vector<16x256xf32> to vector<256xf32>
    %35 = vector.shape_cast %34 : vector<256xf32> to vector<1x256xf32>
    %cst_17 = arith.constant 6.250000e-02 : f32
    %36 = vector.broadcast %cst_17 : f32 to vector<1x256xf32>
    %37 = arith.mulf %35, %36 : vector<1x256xf32>
    %38 = arith.mulf %33, %33 : vector<16x256xf32>
    %cst_18 = arith.constant dense<0.000000e+00> : vector<256xf32>
    %39 = vector.multi_reduction <add>, %38, %cst_18 [0] : vector<16x256xf32> to vector<256xf32>
    %40 = vector.shape_cast %39 : vector<256xf32> to vector<1x256xf32>
    %cst_19 = arith.constant 6.250000e-02 : f32
    %41 = vector.broadcast %cst_19 : f32 to vector<1x256xf32>
    %42 = arith.mulf %40, %41 : vector<1x256xf32>
    %43 = arith.mulf %37, %37 : vector<1x256xf32>
    %44 = arith.subf %42, %43 : vector<1x256xf32>
    %cst_20 = arith.constant 0.000000e+00 : f32
    %45 = vector.broadcast %cst_20 : f32 to vector<1x256xf32>
    %46 = arith.maximumf %44, %45 : vector<1x256xf32>
    %c0_21 = arith.constant 0 : index
    %c0_22 = arith.constant 0 : index
    %47 = vector.load %arg5[%c0_21, %c0_22] : memref<2x256xf32, #tpu.memory_space<vmem>>, vector<1x256xf32>
    %cst_23 = arith.constant 9.99999974E-6 : f32
    %48 = vector.broadcast %cst_23 : f32 to vector<1x256xf32>
    %49 = arith.addf %46, %48 : vector<1x256xf32>
    %50 = math.rsqrt %49 : vector<1x256xf32>
    %51 = arith.mulf %47, %50 : vector<1x256xf32>
    %c1_24 = arith.constant 1 : index
    %c0_25 = arith.constant 0 : index
    %52 = vector.load %arg5[%c1_24, %c0_25] : memref<2x256xf32, #tpu.memory_space<vmem>>, vector<1x256xf32>
    %53 = arith.mulf %37, %51 : vector<1x256xf32>
    %54 = arith.subf %52, %53 : vector<1x256xf32>
    %55 = vector.broadcast %51 : vector<1x256xf32> to vector<16x256xf32>
    %56 = arith.mulf %33, %55 : vector<16x256xf32>
    %57 = vector.broadcast %54 : vector<1x256xf32> to vector<16x256xf32>
    %58 = arith.addf %56, %57 : vector<16x256xf32>
    %cst_26 = arith.constant 0.000000e+00 : f32
    %59 = vector.broadcast %cst_26 : f32 to vector<16x256xf32>
    %60 = arith.maximumf %58, %59 : vector<16x256xf32>
    %c0_27 = arith.constant 0 : index
    %c0_28 = arith.constant 0 : index
    %61 = vector.load %arg6[%c0_27, %c0_28] : memref<1x256xf32, #tpu.memory_space<vmem>>, vector<1x256xf32>
    %62 = vector.broadcast %61 : vector<1x256xf32> to vector<16x256xf32>
    %63 = arith.mulf %60, %62 : vector<16x256xf32>
    %cst_29 = arith.constant dense<0.000000e+00> : vector<16xf32>
    %64 = vector.multi_reduction <add>, %63, %cst_29 [1] : vector<16x256xf32> to vector<16xf32>
    %65 = vector.shape_cast %64 : vector<16xf32> to vector<16x1xf32>
    %c0_30 = arith.constant 0 : index
    %c0_31 = arith.constant 0 : index
    %66 = memref.load %arg0[%c0_30, %c0_31] : memref<1x1xf32, #tpu.memory_space<smem>>
    %67 = vector.broadcast %66 : f32 to vector<16x1xf32>
    %68 = arith.addf %65, %67 : vector<16x1xf32>
    %c0_32 = arith.constant 0 : index
    %c0_33 = arith.constant 0 : index
    %69 = vector.load %arg7[%c0_32, %c0_33] : memref<16x1xf32, #tpu.memory_space<vmem>>, vector<16x1xf32>
    tpu.vector_store %arg7[%c0_32, %c0_33], %68 {strides = array<i32>} : memref<16x1xf32, #tpu.memory_space<vmem>>, vector<16x1xf32>,
    return
  }
}

</mosaic_0001>

<bundles_post_ra>
// kernel: tpu_custom_call.1
= control target key start
LH: loop header
LB: loop body
LE: loop exit
PB: predicated region body
PF: predicated region fallthrough
CT: control target
= control target key end

     0   :  { %13 = vsyncpa [#allocation6], 0  ;;  %s2154_s0 = inlined_call_operand.<no memory space> [shape: f32[1,1], index: 0, kind: input, shape index: {}]   ;;  %s2155_s1 = inlined_call_operand.hbm [shape: f32[16,128], index: 1, kind: input, shape index: {}]   ;;  %s2156_s2 = inlined_call_operand.hbm [shape: bf16[128,1024], index: 2, kind: input, shape index: {}]   ;;  %s2157_s3 = inlined_call_operand.hbm [shape: f32[2,1024], index: 3, kind: input, shape index: {}]   ;;  %s2158_s4 = inlined_call_operand.hbm [shape: bf16[1024,256], index: 4, kind: input, shape index: {}]   ;;  %s2159_s5 = inlined_call_operand.vmem [shape: f32[2,256], index: 5, kind: input, shape index: {}]   ;;  %s2160_s6 = inlined_call_operand.vmem [shape: f32[1,256], index: 6, kind: input, shape index: {}]   ;;  %s2161_s7 = inlined_call_operand.vmem [shape: f32[16,1], index: 7, kind: output, shape index: {}]  }
   0x1   :  { %14 = vsyncpa [#allocation8], 0  ;;  %s1766_s24 = smov [#allocation7]   ;;  %s1694_s28 = scalar_lea.hbm %s2156_s2, 8192 }
   0x2   :  { %s34_s25 = sshll.u32 %s1766_s24, 4  ;;  %p1695_p0 = scmp.ne.s32.totalorder %s2156_s2, %s1694_s28  ;;  %s35_s25 = int_to_ptr.vmem [resolvable:$true] %s34_s25 }
   0x3   :  { %p1698_p1 = scmp.lt.u32.totalorder %s1694_s28, %s2156_s2 }
   0x5   :  { %p1700_p2 = pnand %p1698_p1, %p1695_p0 }
   0x7   :  { %1703 = shalt.err (!%p1700_p2)
}
   0x8   :  { %s1704_s10 = scalar_lea.vmem %s35_s25, 8192  ;;  %p1709_p4 = scmp.lt.s32.totalorder %s35_s25, %s35_s25 }
   0x9   :  { %p1705_p3 = scmp.ne.s32.totalorder %s35_s25, %s1704_s10  ;;  %p1710_p5 = scmp.lt.s32.totalorder %s1704_s10, %s1704_s10 }
   0xb   :  { %p1711_p6 = por %p1710_p5, %p1709_p4 }
   0xd   :  { %p1712_p7 = pnand %p1711_p6, %p1705_p3 }
   0xf   :  { %1715 = shalt.err (!%p1712_p7)
}
  0x10   :  { %s1767_s11 = smov 512   ;;  %s1768_s12 = smov 32  }
  0x11   :  { %40 = dma.hbm_to_vmem [thread:$0]  %s2156_s2, 8192, %s35_s25, [#allocation8], %s1767_s11, %s1767_s11, %s1768_s12  }
  0x12   :  { %s1769_s15 = smov [#allocation5]   ;;  %s1716_s19 = scalar_lea.hbm %s2155_s1, 256 }
  0x13   :  { %s22_s16 = sshll.u32 %s1769_s15, 4  ;;  %p1717_p8 = scmp.ne.s32.totalorder %s2155_s1, %s1716_s19  ;;  %s23_s16 = int_to_ptr.vmem [resolvable:$true] %s22_s16 }
  0x14   :  { %p1720_p9 = scmp.lt.u32.totalorder %s1716_s19, %s2155_s1 }
  0x16   :  { %p1722_p10 = pnand %p1720_p9, %p1717_p8 }
  0x18   :  { %1725 = shalt.err (!%p1722_p10)
}
  0x19   :  { %s1726_s24 = scalar_lea.vmem %s23_s16, 256  ;;  %p1731_p12 = scmp.lt.s32.totalorder %s23_s16, %s23_s16 }
  0x1a   :  { %p1727_p11 = scmp.ne.s32.totalorder %s23_s16, %s1726_s24  ;;  %p1732_p13 = scmp.lt.s32.totalorder %s1726_s24, %s1726_s24 }
  0x1c   :  { %p1733_p0 = por %p1732_p13, %p1731_p12 }
  0x1e   :  { %p1734_p1 = pnand %p1733_p0, %p1727_p11 }
  0x20   :  { %1737 = shalt.err (!%p1734_p1)
}
  0x21   :  { %s1770_s2 = smov 128   ;;  %s1771_s25 = smov 8  }
  0x22   :  { %28 = dma.hbm_to_vmem [thread:$0]  %s2155_s1, 256, %s23_s16, [#allocation6], %s1770_s2, %s1770_s2, %s1771_s25  }
  0x23   :  { %s1772_s28 = smov [#allocation9]   ;;  %s1738_s9 = scalar_lea.hbm %s2157_s3, 256 }
  0x24   :  { %s47_s29 = sshll.u32 %s1772_s28, 4  ;;  %p1739_p2 = scmp.ne.s32.totalorder %s2157_s3, %s1738_s9  ;;  %s48_s29 = int_to_ptr.vmem [resolvable:$true] %s47_s29 }
  0x25   :  { %p1742_p3 = scmp.lt.u32.totalorder %s1738_s9, %s2157_s3 }
  0x27   :  { %p1744_p4 = pnand %p1742_p3, %p1739_p2 }
  0x29   :  { %1747 = shalt.err (!%p1744_p4)
}
  0x2a   :  { %s1748_s14 = scalar_lea.vmem %s48_s29, 256  ;;  %p1753_p6 = scmp.lt.s32.totalorder %s48_s29, %s48_s29 }
  0x2b   :  { %p1749_p5 = scmp.ne.s32.totalorder %s48_s29, %s1748_s14  ;;  %p1754_p7 = scmp.lt.s32.totalorder %s1748_s14, %s1748_s14 }
  0x2d   :  { %p1755_p8 = por %p1754_p7, %p1753_p6 }
  0x2f   :  { %p1756_p9 = pnand %p1755_p8, %p1749_p5 }
  0x31   :  { %1759 = shalt.err (!%p1756_p9)
}
  0x32   :  { %50 = dma.hbm_to_vmem [thread:$0]  %s2157_s3, 256, %s48_s29, [#allocation8]  }
  0x33   :  { %1760 = dma.done.wait [#allocation6], 256  }
  0x34   :  { %1761 = vsyncadd [#allocation6], 4294967040 }
  0x35   :  { %1762 = dma.done.wait [#allocation8], 8448  }
  0x36   :  { %1763 = vsyncadd [#allocation8], 4294958848  ;;  %s69_s16 = sld [smem:[#allocation0]]   ;;  %s1773_s17 = smov 256   ;;  %v1774_v0 = vmov 0  }
  0x37   :  { %81 = sst [smem:[#allocation11]] %s1773_s17  ;;  %519 = vmatprep.mubr.bf16.mxu0 %v1774_v0  ;;  %562 = vmatprep.mubr.bf16.mxu1 %v1774_v0  ;;  %s1775_s18 = smov 2  }
  0x38   :  { %83 = sst [smem:[#allocation11 + $0x1]] %s1773_s17  ;;  %s1776_s19 = smov 64  }
  0x39   :  { %85 = sst [smem:[#allocation11 + $0x2]] %s1775_s18  ;;  %s1777_s3 = smov [#allocation2]  }
  0x3a   :  { %87 = sst [smem:[#allocation11 + $0x3]] %s1776_s19  ;;  %s77_s20 = sshll.u32 %s1777_s3, 4  ;;  %s78_s20 = int_to_ptr.vmem [resolvable:$true] %s77_s20 }
  0x3b   :  { %89 = sst [smem:[#allocation11 + $0x4]] %s1770_s2  ;;  %s1778_s23 = smov 4  }
  0x3c   :  { %91 = sst [smem:[#allocation11 + $0x5]] %s1775_s18  ;;  %s1578_s21 = sshll.u32 %s69_s16, 26 }
  0x3d   :  { %93 = sst [smem:[#allocation11 + $0x6]] %s1770_s2  ;;  %s1579_s22 = sadd.s32 134217728, %s1578_s21 }
  0x3e   :  { %95 = sst [smem:[#allocation11 + $0x7]] %s1776_s19  ;;  %s1779_s24 = smov [#allocation3]  }
  0x3f   :  { %97 = sst [smem:[#allocation11 + $0x8]] %s1778_s23  ;;  %s1780_s25 = smov [#allocation10]  }
  0x40   :  { %99 = dma.general %s2158_s4, 16384, %s78_s20, %s1779_s24, %s1780_s25, [#allocation11], %s1579_s22, 0  }
  0x41   :  { %v103_v1 = vld [vmem:[#allocation7] sm:$0xff]  ;;  %v104_v3 = vld [vmem:[#allocation7 + $0x8] sm:$0xff]  ;;  %v105_v63 = vld [vmem:[#allocation7 + $0x10] sm:$0xff] }
  0x42   :  { %v107_v2 = vld [vmem:[#allocation7 + $0x20] sm:$0xff]  ;;  %v108_v5 = vld [vmem:[#allocation7 + $0x28] sm:$0xff] }
  0x43   :  { %v1581_v4 = vcombine.high %v103_v1, %v107_v2  ;;  %v1580_v6 = vcombine.low %v103_v1, %v107_v2  ;;  %v111_v7 = vld [vmem:[#allocation7 + $0x40] sm:$0xff]  ;;  %v1583_v9 = vcombine.high %v104_v3, %v108_v5  ;;  %v1582_v10 = vcombine.low %v104_v3, %v108_v5  ;;  %v112_v12 = vld [vmem:[#allocation7 + $0x48] sm:$0xff]  ;;  %v109_v1 = vld [vmem:[#allocation7 + $0x30] sm:$0xff] }
  0x44   :  { %v115_v8 = vld [vmem:[#allocation7 + $0x60] sm:$0xff]  ;;  %v116_v13 = vld [vmem:[#allocation7 + $0x68] sm:$0xff]  ;;  %v106_v2 = vld [vmem:[#allocation7 + $0x18] sm:$0xff] }
  0x45   :  { %v1589_v11 = vcombine.high %v111_v7, %v115_v8  ;;  %v119_v14 = vld [vmem:[#allocation7 + $0x80] sm:$0xff]  ;;  %487 = vmatprep.subr.bf16.mxu0 %v1581_v4  ;;  %v1591_v15 = vcombine.high %v112_v12, %v116_v13  ;;  %v120_v17 = vld [vmem:[#allocation7 + $0x88] sm:$0xff]  ;;  %530 = vmatprep.subr.bf16.mxu1 %v1583_v9  ;;  %v1588_v19 = vcombine.low %v111_v7, %v115_v8  ;;  %v110_v3 = vld [vmem:[#allocation7 + $0x38] sm:$0xff] }
  0x46   :  { %v123_v16 = vld [vmem:[#allocation7 + $0xa0] sm:$0xff]  ;;  %v124_v18 = vld [vmem:[#allocation7 + $0xa8] sm:$0xff]  ;;  %488 = vmatpush1.bf16.msra.mxu0 %v1580_v6  ;;  %531 = vmatpush1.bf16.msra.mxu1 %v1582_v10  ;;  %v1590_v20 = vcombine.low %v112_v12, %v116_v13  ;;  %v100_v5 = vld [vmem:[#allocation5] sm:$0xff]  ;;  %v1585_v8 = vcombine.high %v105_v63, %v109_v1  ;;  %v1587_v9 = vcombine.high %v106_v2, %v110_v3 }
  0x47   :  { %489 = vmatprep.subr.bf16.mxu0 %v1589_v11  ;;  %v1597_v21 = vcombine.high %v119_v14, %v123_v16  ;;  %532 = vmatprep.subr.bf16.mxu1 %v1591_v15  ;;  %v1599_v22 = vcombine.high %v120_v17, %v124_v18  ;;  %v127_v23 = vld [vmem:[#allocation7 + $0xc0] sm:$0xff]  ;;  %v128_v25 = vld [vmem:[#allocation7 + $0xc8] sm:$0xff]  ;;  %v1596_v27 = vcombine.low %v119_v14, %v123_v16  ;;  %v101_v6 = vld [vmem:[#allocation5 + $0x8] sm:$0xff] }
  0x48   :  { %v131_v24 = vld [vmem:[#allocation7 + $0xe0] sm:$0xff]  ;;  %v132_v26 = vld [vmem:[#allocation7 + $0xe8] sm:$0xff]  ;;  %v1598_v28 = vcombine.low %v120_v17, %v124_v18  ;;  %v113_v10 = vld [vmem:[#allocation7 + $0x50] sm:$0xff]  ;;  %v1867_v12 = vpack.c.bf16 %v101_v6, %v100_v5  ;;  %v1584_v15 = vcombine.low %v105_v63, %v109_v1  ;;  %v1586_v16 = vcombine.low %v106_v2, %v110_v3 }
  0x49   :  { %v1605_v29 = vcombine.high %v127_v23, %v131_v24  ;;  %v1607_v30 = vcombine.high %v128_v25, %v132_v26  ;;  %v135_v31 = vld [vmem:[#allocation7 + $0x100] sm:$0xff]  ;;  %v136_v33 = vld [vmem:[#allocation7 + $0x108] sm:$0xff]  ;;  %v1604_v35 = vcombine.low %v127_v23, %v131_v24  ;;  %v1606_v36 = vcombine.low %v128_v25, %v132_v26  ;;  %v117_v11 = vld [vmem:[#allocation7 + $0x70] sm:$0xff] }
  0x4a   :  { %490 = vmatpush1.bf16.msra.mxu0 %v1588_v19  ;;  %533 = vmatpush1.bf16.msra.mxu1 %v1590_v20  ;;  %v139_v32 = vld [vmem:[#allocation7 + $0x120] sm:$0xff]  ;;  %v140_v34 = vld [vmem:[#allocation7 + $0x128] sm:$0xff]  ;;  %v114_v13 = vld [vmem:[#allocation7 + $0x58] sm:$0xff]  ;;  %v1593_v17 = vcombine.high %v113_v10, %v117_v11  ;;  %v1592_v23 = vcombine.low %v113_v10, %v117_v11 }
  0x4b   :  { %491 = vmatprep.subr.bf16.mxu0 %v1597_v21  ;;  %534 = vmatprep.subr.bf16.mxu1 %v1599_v22  ;;  %v1613_v37 = vcombine.high %v135_v31, %v139_v32  ;;  %v1615_v38 = vcombine.high %v136_v33, %v140_v34  ;;  %v143_v39 = vld [vmem:[#allocation7 + $0x140] sm:$0xff]  ;;  %v144_v41 = vld [vmem:[#allocation7 + $0x148] sm:$0xff]  ;;  %v1612_v43 = vcombine.low %v135_v31, %v139_v32  ;;  %v118_v14 = vld [vmem:[#allocation7 + $0x78] sm:$0xff] }
  0x4c   :  { %v147_v40 = vld [vmem:[#allocation7 + $0x160] sm:$0xff]  ;;  %v148_v42 = vld [vmem:[#allocation7 + $0x168] sm:$0xff]  ;;  %v1614_v44 = vcombine.low %v136_v33, %v140_v34  ;;  %v1595_v18 = vcombine.high %v114_v13, %v118_v14  ;;  %v121_v19 = vld [vmem:[#allocation7 + $0x90] sm:$0xff]  ;;  %v1594_v24 = vcombine.low %v114_v13, %v118_v14 }
  0x4d   :  { %v1621_v45 = vcombine.high %v143_v39, %v147_v40  ;;  %v1623_v46 = vcombine.high %v144_v41, %v148_v42  ;;  %v151_v47 = vld [vmem:[#allocation7 + $0x180] sm:$0xff]  ;;  %v152_v49 = vld [vmem:[#allocation7 + $0x188] sm:$0xff]  ;;  %v1620_v51 = vcombine.low %v143_v39, %v147_v40  ;;  %v1622_v52 = vcombine.low %v144_v41, %v148_v42  ;;  %v125_v20 = vld [vmem:[#allocation7 + $0xb0] sm:$0xff] }
  0x4e   :  { %492 = vmatpush1.bf16.msra.mxu0 %v1596_v27  ;;  %535 = vmatpush1.bf16.msra.mxu1 %v1598_v28  ;;  %v155_v48 = vld [vmem:[#allocation7 + $0x1a0] sm:$0xff]  ;;  %v156_v50 = vld [vmem:[#allocation7 + $0x1a8] sm:$0xff]  ;;  %v122_v21 = vld [vmem:[#allocation7 + $0x98] sm:$0xff]  ;;  %v1601_v25 = vcombine.high %v121_v19, %v125_v20  ;;  %v1600_v31 = vcombine.low %v121_v19, %v125_v20 }
  0x4f   :  { %493 = vmatprep.subr.bf16.mxu0 %v1605_v29  ;;  %536 = vmatprep.subr.bf16.mxu1 %v1607_v30  ;;  %v1629_v53 = vcombine.high %v151_v47, %v155_v48  ;;  %v1631_v54 = vcombine.high %v152_v49, %v156_v50  ;;  %v159_v55 = vld [vmem:[#allocation7 + $0x1c0] sm:$0xff]  ;;  %v160_v57 = vld [vmem:[#allocation7 + $0x1c8] sm:$0xff]  ;;  %v1628_v59 = vcombine.low %v151_v47, %v155_v48  ;;  %v126_v22 = vld [vmem:[#allocation7 + $0xb8] sm:$0xff] }
  0x50   :  { %v163_v56 = vld [vmem:[#allocation7 + $0x1e0] sm:$0xff]  ;;  %v164_v58 = vld [vmem:[#allocation7 + $0x1e8] sm:$0xff]  ;;  %v1630_v60 = vcombine.low %v152_v49, %v156_v50  ;;  %v1603_v26 = vcombine.high %v122_v21, %v126_v22  ;;  %v129_v27 = vld [vmem:[#allocation7 + $0xd0] sm:$0xff]  ;;  %v1602_v32 = vcombine.low %v122_v21, %v126_v22 }
  0x51   :  { %v1637_v61 = vcombine.high %v159_v55, %v163_v56  ;;  %v1639_v62 = vcombine.high %v160_v57, %v164_v58  ;;  %v1636_v4 = vcombine.low %v159_v55, %v163_v56  ;;  %v1638_v7 = vcombine.low %v160_v57, %v164_v58  ;;  %v133_v28 = vld [vmem:[#allocation7 + $0xf0] sm:$0xff]  ;;  %v130_v29 = vld [vmem:[#allocation7 + $0xd8] sm:$0xff] }
  0x52   :  { %494 = vmatpush1.bf16.msra.mxu0 %v1604_v35  ;;  %537 = vmatpush1.bf16.msra.mxu1 %v1606_v36  ;;  %v134_v30 = vld [vmem:[#allocation7 + $0xf8] sm:$0xff]  ;;  %v1609_v33 = vcombine.high %v129_v27, %v133_v28  ;;  %v137_v35 = vld [vmem:[#allocation7 + $0x110] sm:$0xff]  ;;  %v1608_v39 = vcombine.low %v129_v27, %v133_v28 }
  0x53   :  { %495 = vmatprep.subr.bf16.mxu0 %v1613_v37  ;;  %538 = vmatprep.subr.bf16.mxu1 %v1615_v38  ;;  %v1611_v34 = vcombine.high %v130_v29, %v134_v30  ;;  %v141_v36 = vld [vmem:[#allocation7 + $0x130] sm:$0xff]  ;;  %v138_v37 = vld [vmem:[#allocation7 + $0x118] sm:$0xff]  ;;  %v1610_v40 = vcombine.low %v130_v29, %v134_v30 }
  0x54   :  { %v142_v38 = vld [vmem:[#allocation7 + $0x138] sm:$0xff]  ;;  %v1617_v41 = vcombine.high %v137_v35, %v141_v36  ;;  %v145_v42 = vld [vmem:[#allocation7 + $0x150] sm:$0xff] }
  0x55   :  { %v1618_v47 = vcombine.low %v138_v37, %v142_v38  ;;  %v153_v50 = vld [vmem:[#allocation7 + $0x190] sm:$0xff] }
  0x56   :  { %496 = vmatpush1.bf16.msra.mxu0 %v1612_v43  ;;  %539 = vmatpush1.bf16.msra.mxu1 %v1614_v44  ;;  %v149_v43 = vld [vmem:[#allocation7 + $0x170] sm:$0xff]  ;;  %v146_v44 = vld [vmem:[#allocation7 + $0x158] sm:$0xff] }
  0x57   :  { %497 = vmatprep.subr.bf16.mxu0 %v1621_v45  ;;  %540 = vmatprep.subr.bf16.mxu1 %v1623_v46  ;;  %v150_v45 = vld [vmem:[#allocation7 + $0x178] sm:$0xff]  ;;  %v1616_v46 = vcombine.low %v137_v35, %v141_v36  ;;  %v1625_v48 = vcombine.high %v145_v42, %v149_v43  ;;  %v161_v58 = vld [vmem:[#allocation7 + $0x1d0] sm:$0xff] }
  0x58   :  { %v1627_v49 = vcombine.high %v146_v44, %v150_v45  ;;  %v1626_v55 = vcombine.low %v146_v44, %v150_v45 }
  0x5a   :  { %498 = vmatpush1.bf16.msra.mxu0 %v1620_v51  ;;  %541 = vmatpush1.bf16.msra.mxu1 %v1622_v52  ;;  %v157_v51 = vld [vmem:[#allocation7 + $0x1b0] sm:$0xff]  ;;  %v154_v52 = vld [vmem:[#allocation7 + $0x198] sm:$0xff] }
  0x5b   :  { %499 = vmatprep.subr.bf16.mxu0 %v1629_v53  ;;  %542 = vmatprep.subr.bf16.mxu1 %v1631_v54  ;;  %v158_v53 = vld [vmem:[#allocation7 + $0x1b8] sm:$0xff]  ;;  %v1624_v54 = vcombine.low %v145_v42, %v149_v43  ;;  %v1633_v56 = vcombine.high %v153_v50, %v157_v51 }
  0x5c   :  { %v1635_v57 = vcombine.high %v154_v52, %v158_v53  ;;  %v1634_v63 = vcombine.low %v154_v52, %v158_v53 }
  0x5e   :  { %500 = vmatpush1.bf16.msra.mxu0 %v1628_v59  ;;  %543 = vmatpush1.bf16.msra.mxu1 %v1630_v60  ;;  %v165_v59 = vld [vmem:[#allocation7 + $0x1f0] sm:$0xff]  ;;  %v162_v60 = vld [vmem:[#allocation7 + $0x1d8] sm:$0xff] }
  0x5f   :  { %501 = vmatprep.subr.bf16.mxu0 %v1637_v61  ;;  %544 = vmatprep.subr.bf16.mxu1 %v1639_v62  ;;  %v166_v61 = vld [vmem:[#allocation7 + $0x1f8] sm:$0xff]  ;;  %v1632_v62 = vcombine.low %v153_v50, %v157_v51  ;;  %v1641_v1 = vcombine.high %v161_v58, %v165_v59  ;;  %v1640_v3 = vcombine.low %v161_v58, %v165_v59 }
  0x60   :  { %v1643_v2 = vcombine.high %v162_v60, %v166_v61 }
  0x62   :  { %502 = vmatpush1.bf16.msra.mxu0 %v1636_v4  ;;  %545 = vmatpush1.bf16.msra.mxu1 %v1638_v7  ;;  %v1642_v4 = vcombine.low %v162_v60, %v166_v61 }
  0x63   :  { %573 = vmatprep.subr.bf16.mxu0 %v1585_v8  ;;  %616 = vmatprep.subr.bf16.mxu1 %v1587_v9 }
  0x65   :  { %520 = vmatmul.mubr.bf16.vlgmr.msra.gmra.mrb[0].mxu0 %v1867_v12  ;;  %563 = vmatmul.mubr.bf16.vlgmr.msra.gmra.mrb[0].mxu1 %v1867_v12 }
  0x66   :  { %574 = vmatpush1.bf16.msra.mxu0 %v1584_v15  ;;  %617 = vmatpush1.bf16.msra.mxu1 %v1586_v16 }
  0x67   :  { %575 = vmatprep.subr.bf16.mxu0 %v1593_v17  ;;  %618 = vmatprep.subr.bf16.mxu1 %v1595_v18 }
  0x68   :  { %605 = vmatprep.mubr.bf16.mxu0 %v1774_v0  ;;  %648 = vmatprep.mubr.bf16.mxu1 %v1774_v0  ;;  %v1619_v0 = vcombine.high %v138_v37, %v142_v38 }
  0x6a   :  { %576 = vmatpush1.bf16.msra.mxu0 %v1592_v23  ;;  %619 = vmatpush1.bf16.msra.mxu1 %v1594_v24 }
  0x6b   :  { %577 = vmatprep.subr.bf16.mxu0 %v1601_v25  ;;  %620 = vmatprep.subr.bf16.mxu1 %v1603_v26 }
  0x6e   :  { %578 = vmatpush1.bf16.msra.mxu0 %v1600_v31  ;;  %621 = vmatpush1.bf16.msra.mxu1 %v1602_v32 }
  0x6f   :  { %579 = vmatprep.subr.bf16.mxu0 %v1609_v33  ;;  %622 = vmatprep.subr.bf16.mxu1 %v1611_v34 }
  0x72   :  { %580 = vmatpush1.bf16.msra.mxu0 %v1608_v39  ;;  %623 = vmatpush1.bf16.msra.mxu1 %v1610_v40 }
  0x73   :  { %581 = vmatprep.subr.bf16.mxu0 %v1617_v41  ;;  %624 = vmatprep.subr.bf16.mxu1 %v1619_v0 }
  0x76   :  { %582 = vmatpush1.bf16.msra.mxu0 %v1616_v46  ;;  %625 = vmatpush1.bf16.msra.mxu1 %v1618_v47 }
  0x77   :  { %583 = vmatprep.subr.bf16.mxu0 %v1625_v48  ;;  %626 = vmatprep.subr.bf16.mxu1 %v1627_v49 }
  0x7a   :  { %584 = vmatpush1.bf16.msra.mxu0 %v1624_v54  ;;  %627 = vmatpush1.bf16.msra.mxu1 %v1626_v55 }
  0x7b   :  { %585 = vmatprep.subr.bf16.mxu0 %v1633_v56  ;;  %628 = vmatprep.subr.bf16.mxu1 %v1635_v57 }
  0x7e   :  { %586 = vmatpush1.bf16.msra.mxu0 %v1632_v62  ;;  %629 = vmatpush1.bf16.msra.mxu1 %v1634_v63 }
  0x7f   :  { %587 = vmatprep.subr.bf16.mxu0 %v1641_v1  ;;  %630 = vmatprep.subr.bf16.mxu1 %v1643_v2 }
  0x82   :  { %588 = vmatpush1.bf16.msra.mxu0 %v1640_v3  ;;  %631 = vmatpush1.bf16.msra.mxu1 %v1642_v4 }
  0x85   :  { %606 = vmatmul.mubr.bf16.vlgmr.msra.gmra.mrb[4].mxu0 %v1867_v12  ;;  %649 = vmatmul.mubr.bf16.vlgmr.msra.gmra.mrb[4].mxu1 %v1867_v12 }
 0x138   :  { %v1875_v5 = vpop.f32.mrb[0].mxu0  ;;  %v1879_v7 = vpop.f32.mrb[0].mxu1 }
 0x139   :  { %v723_v6 = vmul.f32 %v1875_v5, %v1875_v5  ;;  %v1881_v8 = vpop.f32.mrb[1].mxu0  ;;  %v725_v9 = vmul.f32 %v1879_v7, %v1879_v7  ;;  %v1885_v10 = vpop.f32.mrb[1].mxu1 }
 0x13a   :  { %v1887_v11 = vpop.f32.mrb[2].mxu0  ;;  %v724_v13 = vmul.f32 %v1881_v8, %v1881_v8  ;;  %v726_v12 = vmul.f32 %v1885_v10, %v1885_v10  ;;  %v1897_v16 = vpop.f32.mrb[2].mxu1 }
 0x13b   :  { %v659_v14 = vadd.f32 %v1887_v11, %v1875_v5  ;;  %v731_v15 = vmul.f32 %v1887_v11, %v1887_v11  ;;  %v1899_v17 = vpop.f32.mrb[3].mxu0  ;;  %v673_v18 = vadd.f32 %v1897_v16, %v1879_v7  ;;  %v733_v19 = vmul.f32 %v1897_v16, %v1897_v16  ;;  %v1909_v22 = vpop.f32.mrb[3].mxu1 }
 0x13c   :  { %v666_v20 = vadd.f32 %v1899_v17, %v1881_v8  ;;  %v732_v21 = vmul.f32 %v1899_v17, %v1899_v17  ;;  %v680_v25 = vadd.f32 %v1909_v22, %v1885_v10  ;;  %v734_v26 = vmul.f32 %v1909_v22, %v1909_v22 }
 0x13d   :  { %v660_v23 = vrot.slane %v659_v14, 4  ;;  %v739_v24 = vadd.f32 %v731_v15, %v723_v6  ;;  %v674_v27 = vrot.slane %v673_v18, 4  ;;  %v753_v28 = vadd.f32 %v733_v19, %v725_v9 }
 0x13e   :  { %v667_v29 = vrot.slane %v666_v20, 4  ;;  %v746_v30 = vadd.f32 %v732_v21, %v724_v13  ;;  %v681_v33 = vrot.slane %v680_v25, 4  ;;  %v760_v34 = vadd.f32 %v734_v26, %v726_v12 }
 0x13f   :  { %v661_v31 = vadd.f32 %v660_v23, %v659_v14  ;;  %v740_v32 = vrot.slane %v739_v24, 4  ;;  %v675_v35 = vadd.f32 %v674_v27, %v673_v18  ;;  %v754_v36 = vrot.slane %v753_v28, 4 }
 0x140   :  { %v668_v37 = vadd.f32 %v667_v29, %v666_v20  ;;  %v747_v38 = vrot.slane %v746_v30, 4  ;;  %v682_v41 = vadd.f32 %v681_v33, %v680_v25  ;;  %v761_v0 = vrot.slane %v760_v34, 4 }
 0x141   :  { %v662_v39 = vrot.slane %v661_v31, 2  ;;  %v741_v40 = vadd.f32 %v740_v32, %v739_v24  ;;  %v676_v42 = vrot.slane %v675_v35, 2  ;;  %v755_v43 = vadd.f32 %v754_v36, %v753_v28 }
 0x142   :  { %v669_v44 = vrot.slane %v668_v37, 2  ;;  %v748_v45 = vadd.f32 %v747_v38, %v746_v30  ;;  %v683_v48 = vrot.slane %v682_v41, 2  ;;  %v762_v49 = vadd.f32 %v761_v0, %v760_v34 }
 0x143   :  { %v663_v46 = vadd.f32 %v662_v39, %v661_v31  ;;  %v742_v47 = vrot.slane %v741_v40, 2  ;;  %v677_v50 = vadd.f32 %v676_v42, %v675_v35  ;;  %v756_v51 = vrot.slane %v755_v43, 2 }
 0x144   :  { %v670_v52 = vadd.f32 %v669_v44, %v668_v37  ;;  %v749_v53 = vrot.slane %v748_v45, 2  ;;  %v684_v56 = vadd.f32 %v683_v48, %v682_v41  ;;  %v763_v57 = vrot.slane %v762_v49, 2 }
 0x145   :  { %v664_v54 = vrot.slane %v663_v46, 1  ;;  %v743_v55 = vadd.f32 %v742_v47, %v741_v40  ;;  %v678_v58 = vrot.slane %v677_v50, 1  ;;  %v757_v59 = vadd.f32 %v756_v51, %v755_v43 }
 0x146   :  { %v671_v60 = vrot.slane %v670_v52, 1  ;;  %v750_v61 = vadd.f32 %v749_v53, %v748_v45  ;;  %v685_v1 = vrot.slane %v684_v56, 1  ;;  %v764_v2 = vadd.f32 %v763_v57, %v762_v49 }
 0x147   :  { %v665_v62 = vadd.f32 %v664_v54, %v663_v46  ;;  %v744_v63 = vrot.slane %v743_v55, 1  ;;  %v679_v3 = vadd.f32 %v678_v58, %v677_v50  ;;  %v758_v4 = vrot.slane %v757_v59, 1 }
 0x148   :  { %v672_v6 = vadd.f32 %v671_v60, %v670_v52  ;;  %v751_v9 = vrot.slane %v750_v61, 1  ;;  %v686_v14 = vadd.f32 %v685_v1, %v684_v56  ;;  %v765_v15 = vrot.slane %v764_v2, 1 }
 0x149   :  { %v1915_v13 = vmul.f32 0.0625, %v665_v62  ;;  %v745_v12 = vadd.f32 %v744_v63, %v743_v55  ;;  %v1917_v18 = vmul.f32 0.0625, %v679_v3  ;;  %v759_v19 = vadd.f32 %v758_v4, %v757_v59 }
 0x14a   :  { %v1919_v20 = vmul.f32 0.0625, %v672_v6  ;;  %v752_v21 = vadd.f32 %v751_v9, %v750_v61  ;;  %v1923_v25 = vmul.f32 0.0625, %v686_v14  ;;  %v766_v26 = vadd.f32 %v765_v15, %v764_v2 }
 0x14b   :  { %v795_v23 = vmul.f32 0.0625, %v745_v12  ;;  %v803_v24 = vmul.f32 %v1915_v13, %v1915_v13  ;;  %v797_v27 = vmul.f32 0.0625, %v759_v19  ;;  %v805_v28 = vmul.f32 %v1917_v18, %v1917_v18 }
 0x14c   :  { %v796_v29 = vmul.f32 0.0625, %v752_v21  ;;  %v804_v30 = vmul.f32 %v1919_v20, %v1919_v20  ;;  %v798_v32 = vmul.f32 0.0625, %v766_v26  ;;  %v806_v33 = vmul.f32 %v1923_v25, %v1923_v25 }
 0x14d   :  { %v811_v31 = vsub.f32 %v795_v23, %v803_v24  ;;  %v813_v34 = vsub.f32 %v797_v27, %v805_v28  ;;  %v1781_v43 = vmov 1966171168   ;;  %v859_v45 = vlaneseq }
 0x14e   :  { %v812_v35 = vsub.f32 %v796_v29, %v804_v30  ;;  %v814_v37 = vsub.f32 %v798_v32, %v806_v33  ;;  %v857_v44 = vunpack.c.l.s4 %v1781_v43 }
 0x14f   :  { %v819_v36 = vmax.f32 %v811_v31, 0.0  ;;  %v821_v38 = vmax.f32 %v813_v34, 0.0  ;;  %v1931_v48 = vshrl.u32 %v859_v45, 7 }
 0x150   :  { %v820_v39 = vmax.f32 %v812_v35, 0.0  ;;  %v822_v41 = vmax.f32 %v814_v37, 0.0  ;;  %v858_v47 = vunpack.c.0.s8 %v857_v44 }
 0x151   :  { %v828_v40 = vadd.f32 1e-05, %v819_v36  ;;  %v830_v0 = vadd.f32 1e-05, %v821_v38 }
 0x152   :  { %v829_v42 = vadd.f32 1e-05, %v820_v39  ;;  %v831_v46 = vadd.f32 1e-05, %v822_v41  ;;  %v1940_v52 = vsub.s32 %v858_v47, %v1931_v48 }
 0x153   :  { %1674 = vrsqrt.f32 %v828_v40 }
 0x154   :  { %1676 = vrsqrt.f32 %v830_v0 }
 0x155   :  { %1678 = vrsqrt.f32 %v829_v42 }
 0x156   :  { %1680 = vrsqrt.f32 %v831_v46 }
 0x158   :  { %v1933_v49 = vpop.f32.mrb[4].mxu0  ;;  %v1935_v50 = vpop.f32.mrb[4].mxu1 }
 0x159   :  { %v1937_v51 = vpop.f32.mrb[5].mxu0  ;;  %v727_v53 = vmul.f32 %v1933_v49, %v1933_v49  ;;  %v729_v54 = vmul.f32 %v1935_v50, %v1935_v50  ;;  %v1946_v55 = vpop.f32.mrb[5].mxu1 }
 0x15a   :  { %v1948_v56 = vpop.f32.mrb[6].mxu0  ;;  %v728_v57 = vmul.f32 %v1937_v51, %v1937_v51  ;;  %v730_v58 = vmul.f32 %v1946_v55, %v1946_v55  ;;  %v1958_v61 = vpop.f32.mrb[6].mxu1 }
 0x15b   :  { %v687_v59 = vadd.f32 %v1948_v56, %v1933_v49  ;;  %v735_v60 = vmul.f32 %v1948_v56, %v1948_v56  ;;  %v1960_v62 = vpop.f32.mrb[7].mxu0  ;;  %v701_v63 = vadd.f32 %v1958_v61, %v1935_v50  ;;  %v737_v1 = vmul.f32 %v1958_v61, %v1958_v61  ;;  %v1970_v4 = vpop.f32.mrb[7].mxu1 }
 0x15c   :  { %v694_v2 = vadd.f32 %v1960_v62, %v1937_v51  ;;  %v736_v3 = vmul.f32 %v1960_v62, %v1960_v62  ;;  %v708_v14 = vadd.f32 %v1970_v4, %v1946_v55  ;;  %v738_v15 = vmul.f32 %v1970_v4, %v1970_v4 }
 0x15d   :  { %v1675_v6 = vpop.eup %1674  ;;  %v688_v9 = vrot.slane %v687_v59, 4  ;;  %v767_v12 = vadd.f32 %v735_v60, %v727_v53  ;;  %v702_v21 = vrot.slane %v701_v63, 4  ;;  %v781_v23 = vadd.f32 %v737_v1, %v729_v54 }
 0x15e   :  { %v1677_v19 = vpop.eup %1676  ;;  %v695_v24 = vrot.slane %v694_v2, 4  ;;  %v774_v26 = vadd.f32 %v736_v3, %v728_v57  ;;  %v709_v30 = vrot.slane %v708_v14, 4  ;;  %v788_v31 = vadd.f32 %v738_v15, %v730_v58 }
 0x15f   :  { %v1679_v27 = vpop.eup %1678  ;;  %v689_v28 = vadd.f32 %v688_v9, %v687_v59  ;;  %v768_v29 = vrot.slane %v767_v12, 4  ;;  %v703_v34 = vadd.f32 %v702_v21, %v701_v63  ;;  %v782_v35 = vrot.slane %v781_v23, 4 }
 0x160   :  { %v1681_v32 = vpop.eup %1680  ;;  %v852_v33 = vcombine.low %v1675_v6, %v1679_v27  ;;  %v696_v36 = vadd.f32 %v695_v24, %v694_v2  ;;  %v775_v40 = vrot.slane %v774_v26, 4  ;;  %v710_v58 = vadd.f32 %v709_v30, %v708_v14 }
 0x161   :  { %v853_v37 = vcombine.low %v1677_v19, %v1681_v32  ;;  %v690_v38 = vrot.slane %v689_v28, 2  ;;  %v769_v39 = vadd.f32 %v768_v29, %v767_v12  ;;  %v704_v0 = vrot.slane %v703_v34, 2 }
 0x162   :  { %v1977_v41 = vrot.slane %v852_v33, %v1940_v52  ;;  %v783_v42 = vadd.f32 %v782_v35, %v781_v23  ;;  %v697_v43 = vrot.slane %v696_v36, 2  ;;  %v776_v47 = vadd.f32 %v775_v40, %v774_v26 }
 0x163   :  { %v1980_v44 = vrot.slane %v853_v37, %v1940_v52  ;;  %v691_v45 = vadd.f32 %v690_v38, %v689_v28  ;;  %v770_v46 = vrot.slane %v769_v39, 2  ;;  %v705_v53 = vadd.f32 %v704_v0, %v703_v34 }
 0x164   :  { %v784_v54 = vrot.slane %v783_v42, 2  ;;  %v698_v57 = vadd.f32 %v697_v43, %v696_v36  ;;  %v777_v1 = vrot.slane %v776_v47, 2  ;;  %v711_v9 = vrot.slane %v710_v58, 2 }
 0x165   :  { %v884_v59 = vcombine.low %v1977_v41, %v1980_v44  ;;  %v692_v60 = vrot.slane %v691_v45, 1  ;;  %v771_v63 = vadd.f32 %v770_v46, %v769_v39  ;;  %v706_v2 = vrot.slane %v705_v53, 1 }
 0x166   :  { %v785_v3 = vadd.f32 %v784_v54, %v783_v42  ;;  %v699_v6 = vrot.slane %v698_v57, 1  ;;  %v778_v19 = vadd.f32 %v777_v1, %v776_v47  ;;  %v712_v26 = vadd.f32 %v711_v9, %v710_v58 }
 0x167   :  { %v693_v12 = vadd.f32 %v692_v60, %v691_v45  ;;  %v772_v15 = vrot.slane %v771_v63, 1  ;;  %v707_v21 = vadd.f32 %v706_v2, %v705_v53  ;;  %v789_v29 = vrot.slane %v788_v31, 4 }
 0x168   :  { %v786_v23 = vrot.slane %v785_v3, 1  ;;  %v700_v24 = vadd.f32 %v699_v6, %v698_v57  ;;  %v779_v28 = vrot.slane %v778_v19, 1  ;;  %v713_v34 = vrot.slane %v712_v26, 1 }
 0x169   :  { %v1984_v27 = vmul.f32 0.0625, %v693_v12  ;;  %v773_v14 = vadd.f32 %v772_v15, %v771_v63  ;;  %v1986_v30 = vmul.f32 0.0625, %v707_v21  ;;  %v790_v38 = vadd.f32 %v789_v29, %v788_v31 }
 0x16a   :  { %v787_v32 = vadd.f32 %v786_v23, %v785_v3  ;;  %v1988_v33 = vmul.f32 0.0625, %v700_v24  ;;  %v780_v37 = vadd.f32 %v779_v28, %v778_v19  ;;  %v714_v42 = vadd.f32 %v713_v34, %v712_v26 }
 0x16b   :  { %v799_v35 = vmul.f32 0.0625, %v773_v14  ;;  %v807_v36 = vmul.f32 %v1984_v27, %v1984_v27  ;;  %v809_v40 = vmul.f32 %v1986_v30, %v1986_v30  ;;  %v791_v46 = vrot.slane %v790_v38, 2 }
 0x16c   :  { %v801_v39 = vmul.f32 0.0625, %v787_v32  ;;  %v808_v0 = vmul.f32 %v1988_v33, %v1988_v33  ;;  %v800_v45 = vmul.f32 0.0625, %v780_v37  ;;  %v722_v57 = vmul.f32 0.0625, %v714_v42 }
 0x16d   :  { %v815_v43 = vsub.f32 %v799_v35, %v807_v36  ;;  %v792_v58 = vadd.f32 %v791_v46, %v790_v38  ;;  %v892_v36 = vrot.slane %v884_v59, %v1940_v52  ;;  %v827_v38 = vld [vmem:[#allocation9] ss:$2 sm:$0xff]  ;;  %v916_v42 = vsub.s32 2, %v1931_v48 }
 0x16e   :  { %v817_v47 = vsub.f32 %v801_v39, %v809_v40  ;;  %v816_v54 = vsub.f32 %v800_v45, %v808_v0  ;;  %v810_v6 = vmul.f32 %v722_v57, %v722_v57  ;;  %v2004_v39 = vsub.s32 0, %v1931_v48 }
 0x16f   :  { %v823_v53 = vmax.f32 %v815_v43, 0.0  ;;  %v793_v1 = vrot.slane %v792_v58, 1  ;;  %v2007_v0 = vsub.s32 1, %v1931_v48  ;;  %v920_v43 = vsub.s32 3, %v1931_v48 }
 0x170   :  { %v824_v63 = vmax.f32 %v816_v54, 0.0  ;;  %v825_v31 = vmax.f32 %v817_v47, 0.0  ;;  %v924_v45 = vsub.s32 4, %v1931_v48  ;;  %v928_v46 = vsub.s32 5, %v1931_v48 }
 0x171   :  { %v832_v60 = vadd.f32 1e-05, %v823_v53  ;;  %v794_v3 = vadd.f32 %v793_v1, %v792_v58  ;;  %v932_v41 = vsub.s32 6, %v1931_v48  ;;  %v936_v44 = vsub.s32 7, %v1931_v48 }
 0x172   :  { %v833_v2 = vadd.f32 1e-05, %v824_v63  ;;  %v834_v12 = vadd.f32 1e-05, %v825_v31 }
 0x173   :  { %1682 = vrsqrt.f32 %v832_v60  ;;  %v802_v9 = vmul.f32 0.0625, %v794_v3 }
 0x174   :  { %1684 = vrsqrt.f32 %v833_v2 }
 0x175   :  { %v818_v15 = vsub.f32 %v802_v9, %v810_v6  ;;  %1686 = vrsqrt.f32 %v834_v12 }
 0x177   :  { %v826_v19 = vmax.f32 %v818_v15, 0.0 }
 0x179   :  { %v835_v21 = vadd.f32 1e-05, %v826_v19 }
 0x17b   :  { %1688 = vrsqrt.f32 %v835_v21 }
 0x17d   :  { %v1683_v23 = vpop.eup %1682 }
 0x17e   :  { %v1685_v24 = vpop.eup %1684 }
 0x17f   :  { %v854_v26 = vcombine.low %v1683_v23, %v1685_v24  ;;  %v1687_v14 = vpop.eup %1686 }
 0x181   :  { %v876_v29 = vrot.slane %v854_v26, %v1940_v52 }
 0x185   :  { %v1689_v28 = vpop.eup %1688 }
 0x186   :  { %v855_v32 = vcombine.low %v1687_v14, %v1689_v28 }
 0x188   :  { %v883_v34 = vrot.slane %v855_v32, %v1940_v52 }
 0x18a   :  { %v885_v35 = vcombine.low %v876_v29, %v883_v34 }
 0x18c   :  { %v899_v37 = vrot.slane %v885_v35, %v1940_v52 }
 0x18e   :  { %v900_v40 = vcombine.low %v892_v36, %v899_v37 }
 0x190   :  { %v902_v59 = vmul.f32 %v900_v40, %v827_v38 }
 0x192   :  { %v909_v47 = vrot.slane %v902_v59, %v2004_v39  ;;  %v913_v53 = vrot.slane %v902_v59, %v2007_v0  ;;  %v917_v54 = vrot.slane %v902_v59, %v916_v42  ;;  %v921_v58 = vrot.slane %v902_v59, %v920_v43 }
 0x193   :  { %v925_v60 = vrot.slane %v902_v59, %v924_v45  ;;  %v929_v63 = vrot.slane %v902_v59, %v928_v46  ;;  %v933_v1 = vrot.slane %v902_v59, %v932_v41  ;;  %v937_v31 = vrot.slane %v902_v59, %v936_v44 }
 0x194   :  { %v946_v2 = vmul.f32 %v909_v47, %v1915_v13  ;;  %v947_v3 = vmul.f32 %v913_v53, %v1919_v20  ;;  %v948_v6 = vmul.f32 %v917_v54, %v1917_v18  ;;  %v949_v9 = vmul.f32 %v921_v58, %v1923_v25 }
 0x195   :  { %v950_v48 = vmul.f32 %v925_v60, %v1984_v27  ;;  %v951_v12 = vmul.f32 %v929_v63, %v1988_v33  ;;  %v952_v15 = vmul.f32 %v933_v1, %v1986_v30  ;;  %v953_v19 = vmul.f32 %v937_v31, %v722_v57 }
 0x196   :  { %v962_v21 = vcombine.low %v946_v2, %v947_v3  ;;  %v963_v23 = vcombine.low %v948_v6, %v949_v9  ;;  %v1013_v24 = vmul.f32 %v909_v47, %v1875_v5  ;;  %v1014_v26 = vmul.f32 %v913_v53, %v1881_v8 }
 0x197   :  { %v964_v13 = vcombine.low %v950_v48, %v951_v12  ;;  %v965_v14 = vcombine.low %v952_v15, %v953_v19  ;;  %v1015_v20 = vmul.f32 %v917_v54, %v1879_v7  ;;  %v1016_v18 = vmul.f32 %v921_v58, %v1885_v10 }
 0x198   :  { %v972_v25 = vrot.slane %v962_v21, %v1940_v52  ;;  %v979_v27 = vrot.slane %v963_v23, %v1940_v52  ;;  %v1017_v33 = vmul.f32 %v925_v60, %v1933_v49  ;;  %v1018_v30 = vmul.f32 %v929_v63, %v1937_v51 }
 0x199   :  { %v986_v57 = vrot.slane %v964_v13, %v1940_v52  ;;  %v993_v5 = vrot.slane %v965_v14, %v1940_v52  ;;  %v1019_v8 = vmul.f32 %v933_v1, %v1935_v50  ;;  %v1020_v28 = vmul.f32 %v937_v31, %v1946_v55 }
 0x19a   :  { %v994_v29 = vcombine.low %v972_v25, %v979_v27  ;;  %v1021_v7 = vmul.f32 %v909_v47, %v1887_v11  ;;  %v1022_v10 = vmul.f32 %v913_v53, %v1899_v17  ;;  %v1023_v32 = vmul.f32 %v917_v54, %v1897_v16  ;;  %v904_v11 = vld [vmem:[#allocation9 + $0x1] ss:$2 sm:$0xff] }
 0x19b   :  { %v995_v34 = vcombine.low %v986_v57, %v993_v5  ;;  %v1024_v49 = vmul.f32 %v921_v58, %v1909_v22  ;;  %v1025_v51 = vmul.f32 %v925_v60, %v1948_v56  ;;  %v1026_v35 = vmul.f32 %v929_v63, %v1960_v62 }
 0x19c   :  { %v1002_v36 = vrot.slane %v994_v29, %v1940_v52  ;;  %v1027_v50 = vmul.f32 %v933_v1, %v1958_v61  ;;  %v1028_v55 = vmul.f32 %v937_v31, %v1970_v4 }
 0x19d   :  { %v1009_v37 = vrot.slane %v995_v34, %v1940_v52 }
 0x19f   :  { %v1010_v38 = vcombine.low %v1002_v36, %v1009_v37 }
 0x1a1   :  { %v1012_v17 = vsub.f32 %v904_v11, %v1010_v38 }
 0x1a3   :  { %v1033_v16 = vrot.slane %v1012_v17, %v2004_v39  ;;  %v1037_v40 = vrot.slane %v1012_v17, %v2007_v0  ;;  %v1041_v22 = vrot.slane %v1012_v17, %v916_v42  ;;  %v1045_v59 = vrot.slane %v1012_v17, %v920_v43 }
 0x1a4   :  { %v1049_v56 = vrot.slane %v1012_v17, %v924_v45  ;;  %v1053_v47 = vrot.slane %v1012_v17, %v928_v46  ;;  %v1057_v62 = vrot.slane %v1012_v17, %v932_v41  ;;  %v1061_v53 = vrot.slane %v1012_v17, %v936_v44 }
 0x1a5   :  { %v2048_v54 = vadd.f32 %v1033_v16, %v1013_v24  ;;  %v1071_v61 = vadd.f32 %v1037_v40, %v1014_v26  ;;  %v2050_v58 = vadd.f32 %v1041_v22, %v1015_v20  ;;  %v2052_v4 = vadd.f32 %v1045_v59, %v1016_v18 }
 0x1a6   :  { %v2054_v60 = vadd.f32 %v1049_v56, %v1017_v33  ;;  %v1075_v63 = vadd.f32 %v1053_v47, %v1018_v30  ;;  %v2056_v1 = vadd.f32 %v1057_v62, %v1019_v8  ;;  %v2058_v31 = vadd.f32 %v1061_v53, %v1020_v28 }
 0x1a7   :  { %v2060_v42 = vadd.f32 %v1033_v16, %v1021_v7  ;;  %v1079_v43 = vadd.f32 %v1037_v40, %v1022_v10  ;;  %v2062_v45 = vadd.f32 %v1041_v22, %v1023_v32  ;;  %v2064_v46 = vadd.f32 %v1045_v59, %v1024_v49 }
 0x1a8   :  { %v2066_v41 = vadd.f32 %v1049_v56, %v1025_v51  ;;  %v1083_v44 = vadd.f32 %v1053_v47, %v1026_v35  ;;  %v2068_v2 = vadd.f32 %v1057_v62, %v1027_v50  ;;  %v2070_v3 = vadd.f32 %v1061_v53, %v1028_v55 }
 0x1a9   :  { %v1086_v6 = vmax.f32 %v2048_v54, 0.0  ;;  %v1087_v9 = vmax.f32 %v1071_v61, 0.0  ;;  %v1088_v48 = vmax.f32 %v2050_v58, 0.0  ;;  %v1089_v12 = vmax.f32 %v2052_v4, 0.0 }
 0x1aa   :  { %v1090_v15 = vmax.f32 %v2054_v60, 0.0  ;;  %v1091_v19 = vmax.f32 %v1075_v63, 0.0  ;;  %v1092_v21 = vmax.f32 %v2056_v1, 0.0  ;;  %v1093_v23 = vmax.f32 %v2058_v31, 0.0 }
 0x1ab   :  { %v1094_v24 = vmax.f32 %v2060_v42, 0.0  ;;  %v1095_v26 = vmax.f32 %v1079_v43, 0.0  ;;  %v1096_v13 = vmax.f32 %v2062_v45, 0.0  ;;  %v1097_v14 = vmax.f32 %v2064_v46, 0.0 }
 0x1ac   :  { %v1098_v20 = vmax.f32 %v2066_v41, 0.0  ;;  %v1099_v18 = vmax.f32 %v1083_v44, 0.0  ;;  %v1100_v25 = vmax.f32 %v2068_v2, 0.0  ;;  %v1101_v27 = vmax.f32 %v2070_v3, 0.0 }
 0x1ad   :  { %1764 = dma.done.wait [#allocation3], 16384 }
 0x1ae   :  { %1765 = vsyncadd [#allocation3], 4294950912  ;;  %v1107_v33 = vpack.c.bf16 %v1095_v26, %v1087_v9  ;;  %v1111_v30 = vpack.c.bf16 %v1099_v18, %v1091_v19  ;;  %v1115_v57 = vld [vmem:[#allocation2 + $0x8] sm:$0xff]  ;;  %v1114_v8 = vld [vmem:[#allocation2] sm:$0xff]  ;;  %v1109_v54 = vpack.c.bf16 %v1097_v14, %v1089_v12  ;;  %v1113_v60 = vpack.c.bf16 %v1101_v27, %v1093_v23 }
 0x1af   :  { %v1179_v5 = vld [vmem:[#allocation2 + $0x208] sm:$0xff]  ;;  %1242 = vmatprep.subr.bf16.mxu1 %v1115_v57  ;;  %v1178_v28 = vld [vmem:[#allocation2 + $0x200] sm:$0xff]  ;;  %v1117_v29 = vld [vmem:[#allocation2 + $0x18] sm:$0xff]  ;;  %vm1563_vm0 = vcmask 7168  }
 0x1b0   :  { %1274 = vmatprep.mubr.bf16.mxu1 %v1107_v33  ;;  %1360 = vmatprep.mubr.bf16.mxu0 %v1111_v30  ;;  %v1181_v7 = vld [vmem:[#allocation2 + $0x218] sm:$0xff]  ;;  %v1116_v10 = vld [vmem:[#allocation2 + $0x10] sm:$0xff]  ;;  %v1119_v34 = vld [vmem:[#allocation2 + $0x28] sm:$0xff] }
 0x1b1   :  { %1328 = vmatprep.subr.bf16.mxu0 %v1179_v5  ;;  %1243 = vmatpush1.bf16.msra.mxu1 %v1114_v8  ;;  %v1180_v32 = vld [vmem:[#allocation2 + $0x210] sm:$0xff]  ;;  %v1183_v49 = vld [vmem:[#allocation2 + $0x228] sm:$0xff]  ;;  %v1118_v51 = vld [vmem:[#allocation2 + $0x20] sm:$0xff] }
 0x1b2   :  { %1329 = vmatpush1.bf16.msra.mxu0 %v1178_v28  ;;  %1244 = vmatprep.subr.bf16.mxu1 %v1117_v29  ;;  %v1182_v35 = vld [vmem:[#allocation2 + $0x220] sm:$0xff]  ;;  %v1121_v36 = vld [vmem:[#allocation2 + $0x38] sm:$0xff]  ;;  %v1120_v55 = vld [vmem:[#allocation2 + $0x30] sm:$0xff] }
 0x1b3   :  { %1330 = vmatprep.subr.bf16.mxu0 %v1181_v7  ;;  %v1185_v50 = vld [vmem:[#allocation2 + $0x238] sm:$0xff]  ;;  %v1184_v37 = vld [vmem:[#allocation2 + $0x230] sm:$0xff]  ;;  %v1123_v11 = vld [vmem:[#allocation2 + $0x48] sm:$0xff] }
 0x1b4   :  { %v1187_v38 = vld [vmem:[#allocation2 + $0x248] sm:$0xff]  ;;  %v1122_v17 = vld [vmem:[#allocation2 + $0x40] sm:$0xff]  ;;  %v1125_v40 = vld [vmem:[#allocation2 + $0x58] sm:$0xff] }
 0x1b5   :  { %1245 = vmatpush1.bf16.msra.mxu1 %v1116_v10  ;;  %v1186_v16 = vld [vmem:[#allocation2 + $0x240] sm:$0xff]  ;;  %v1189_v22 = vld [vmem:[#allocation2 + $0x258] sm:$0xff]  ;;  %v1124_v59 = vld [vmem:[#allocation2 + $0x50] sm:$0xff] }
 0x1b6   :  { %1331 = vmatpush1.bf16.msra.mxu0 %v1180_v32  ;;  %1246 = vmatprep.subr.bf16.mxu1 %v1119_v34  ;;  %v1188_v56 = vld [vmem:[#allocation2 + $0x250] sm:$0xff]  ;;  %v1127_v47 = vld [vmem:[#allocation2 + $0x68] sm:$0xff]  ;;  %v1126_v53 = vld [vmem:[#allocation2 + $0x60] sm:$0xff] }
 0x1b7   :  { %1332 = vmatprep.subr.bf16.mxu0 %v1183_v49  ;;  %v1191_v62 = vld [vmem:[#allocation2 + $0x268] sm:$0xff]  ;;  %v1190_v61 = vld [vmem:[#allocation2 + $0x260] sm:$0xff]  ;;  %v1129_v63 = vld [vmem:[#allocation2 + $0x78] sm:$0xff] }
 0x1b8   :  { %v1193_v43 = vld [vmem:[#allocation2 + $0x278] sm:$0xff]  ;;  %v1128_v44 = vld [vmem:[#allocation2 + $0x70] sm:$0xff]  ;;  %v1131_v19 = vld [vmem:[#allocation2 + $0x88] sm:$0xff] }
 0x1b9   :  { %1247 = vmatpush1.bf16.msra.mxu1 %v1118_v51  ;;  %v1192_v9 = vld [vmem:[#allocation2 + $0x270] sm:$0xff]  ;;  %v1195_v26 = vld [vmem:[#allocation2 + $0x288] sm:$0xff]  ;;  %v1130_v18 = vld [vmem:[#allocation2 + $0x80] sm:$0xff] }
 0x1ba   :  { %1333 = vmatpush1.bf16.msra.mxu0 %v1182_v35  ;;  %1248 = vmatprep.subr.bf16.mxu1 %v1121_v36  ;;  %v1194_v33 = vld [vmem:[#allocation2 + $0x280] sm:$0xff]  ;;  %v1133_v30 = vld [vmem:[#allocation2 + $0x98] sm:$0xff]  ;;  %v1132_v5 = vld [vmem:[#allocation2 + $0x90] sm:$0xff] }
 0x1bb   :  { %1334 = vmatprep.subr.bf16.mxu0 %v1185_v50  ;;  %v1197_v57 = vld [vmem:[#allocation2 + $0x298] sm:$0xff]  ;;  %v1196_v8 = vld [vmem:[#allocation2 + $0x290] sm:$0xff]  ;;  %v1135_v28 = vld [vmem:[#allocation2 + $0xa8] sm:$0xff] }
 0x1bc   :  { %v1199_v29 = vld [vmem:[#allocation2 + $0x2a8] sm:$0xff]  ;;  %v1134_v7 = vld [vmem:[#allocation2 + $0xa0] sm:$0xff]  ;;  %v1137_v32 = vld [vmem:[#allocation2 + $0xb8] sm:$0xff] }
 0x1bd   :  { %1249 = vmatpush1.bf16.msra.mxu1 %v1120_v55  ;;  %v1198_v10 = vld [vmem:[#allocation2 + $0x2a0] sm:$0xff]  ;;  %v1201_v34 = vld [vmem:[#allocation2 + $0x2b8] sm:$0xff]  ;;  %v1136_v49 = vld [vmem:[#allocation2 + $0xb0] sm:$0xff] }
 0x1be   :  { %1335 = vmatpush1.bf16.msra.mxu0 %v1184_v37  ;;  %1250 = vmatprep.subr.bf16.mxu1 %v1123_v11  ;;  %v1200_v51 = vld [vmem:[#allocation2 + $0x2b0] sm:$0xff]  ;;  %v1139_v35 = vld [vmem:[#allocation2 + $0xc8] sm:$0xff]  ;;  %v1138_v50 = vld [vmem:[#allocation2 + $0xc0] sm:$0xff] }
 0x1bf   :  { %1336 = vmatprep.subr.bf16.mxu0 %v1187_v38  ;;  %v1203_v36 = vld [vmem:[#allocation2 + $0x2c8] sm:$0xff]  ;;  %v1202_v55 = vld [vmem:[#allocation2 + $0x2c0] sm:$0xff]  ;;  %v1141_v37 = vld [vmem:[#allocation2 + $0xd8] sm:$0xff] }
 0x1c0   :  { %v1205_v11 = vld [vmem:[#allocation2 + $0x2d8] sm:$0xff]  ;;  %v1140_v38 = vld [vmem:[#allocation2 + $0xd0] sm:$0xff]  ;;  %v1150_v4 = vld [vmem:[#allocation2 + $0x120] sm:$0xff] }
 0x1c1   :  { %1251 = vmatpush1.bf16.msra.mxu1 %v1122_v17  ;;  %v1204_v17 = vld [vmem:[#allocation2 + $0x2d0] sm:$0xff]  ;;  %v1214_v31 = vld [vmem:[#allocation2 + $0x320] sm:$0xff]  ;;  %v1153_v46 = vld [vmem:[#allocation2 + $0x138] sm:$0xff] }
 0x1c2   :  { %1337 = vmatpush1.bf16.msra.mxu0 %v1186_v16  ;;  %1252 = vmatprep.subr.bf16.mxu1 %v1125_v40  ;;  %v1143_v16 = vld [vmem:[#allocation2 + $0xe8] sm:$0xff]  ;;  %v1148_v42 = vld [vmem:[#allocation2 + $0x110] sm:$0xff]  ;;  %v1217_v3 = vld [vmem:[#allocation2 + $0x338] sm:$0xff] }
 0x1c3   :  { %1338 = vmatprep.subr.bf16.mxu0 %v1189_v22  ;;  %v1207_v40 = vld [vmem:[#allocation2 + $0x2e8] sm:$0xff]  ;;  %v1142_v22 = vld [vmem:[#allocation2 + $0xe0] sm:$0xff]  ;;  %v1212_v41 = vld [vmem:[#allocation2 + $0x310] sm:$0xff] }
 0x1c4   :  { %v1152_v12 = vld [vmem:[#allocation2 + $0x130] sm:$0xff]  ;;  %v1219_v14 = vld [vmem:[#allocation2 + $0x348] sm:$0xff]  ;;  %v1218_v27 = vld [vmem:[#allocation2 + $0x340] sm:$0xff] }
 0x1c5   :  { %1253 = vmatpush1.bf16.msra.mxu1 %v1124_v59  ;;  %v1206_v59 = vld [vmem:[#allocation2 + $0x2e0] sm:$0xff]  ;;  %v1216_v23 = vld [vmem:[#allocation2 + $0x330] sm:$0xff] }
 0x1c6   :  { %1339 = vmatpush1.bf16.msra.mxu0 %v1188_v56  ;;  %1254 = vmatprep.subr.bf16.mxu1 %v1127_v47  ;;  %v1145_v56 = vld [vmem:[#allocation2 + $0xf8] sm:$0xff] }
 0x1c7   :  { %1340 = vmatprep.subr.bf16.mxu0 %v1191_v62  ;;  %v1209_v47 = vld [vmem:[#allocation2 + $0x2f8] sm:$0xff]  ;;  %v1144_v62 = vld [vmem:[#allocation2 + $0xf0] sm:$0xff] }
 0x1c9   :  { %1255 = vmatpush1.bf16.msra.mxu1 %v1126_v53  ;;  %v1208_v53 = vld [vmem:[#allocation2 + $0x2f0] sm:$0xff] }
 0x1ca   :  { %1341 = vmatpush1.bf16.msra.mxu0 %v1190_v61  ;;  %1256 = vmatprep.subr.bf16.mxu1 %v1129_v63  ;;  %v1147_v61 = vld [vmem:[#allocation2 + $0x108] sm:$0xff] }
 0x1cb   :  { %1342 = vmatprep.subr.bf16.mxu0 %v1193_v43  ;;  %v1211_v63 = vld [vmem:[#allocation2 + $0x308] sm:$0xff]  ;;  %v1106_v43 = vpack.c.bf16 %v1094_v24, %v1086_v6 }
 0x1cc   :  { %v1151_v6 = vld [vmem:[#allocation2 + $0x128] sm:$0xff] }
 0x1cd   :  { %1257 = vmatpush1.bf16.msra.mxu1 %v1128_v44  ;;  %v1110_v44 = vpack.c.bf16 %v1098_v20, %v1090_v15  ;;  %v1215_v15 = vld [vmem:[#allocation2 + $0x328] sm:$0xff]  ;;  %v1154_v20 = vld [vmem:[#allocation2 + $0x140] sm:$0xff] }
 0x1ce   :  { %1343 = vmatpush1.bf16.msra.mxu0 %v1192_v9  ;;  %1258 = vmatprep.subr.bf16.mxu1 %v1131_v19  ;;  %v1146_v9 = vld [vmem:[#allocation2 + $0x100] sm:$0xff]  ;;  %v1155_v24 = vld [vmem:[#allocation2 + $0x148] sm:$0xff] }
 0x1cf   :  { %1344 = vmatprep.subr.bf16.mxu0 %v1195_v26  ;;  %v1210_v19 = vld [vmem:[#allocation2 + $0x300] sm:$0xff]  ;;  %v1149_v26 = vld [vmem:[#allocation2 + $0x118] sm:$0xff] }
 0x1d1   :  { %1259 = vmatpush1.bf16.msra.mxu1 %v1130_v18  ;;  %v1213_v18 = vld [vmem:[#allocation2 + $0x318] sm:$0xff] }
 0x1d2   :  { %1345 = vmatpush1.bf16.msra.mxu0 %v1194_v33  ;;  %1260 = vmatprep.subr.bf16.mxu1 %v1133_v30  ;;  %v1157_v33 = vld [vmem:[#allocation2 + $0x158] sm:$0xff] }
 0x1d3   :  { %1346 = vmatprep.subr.bf16.mxu0 %v1197_v57  ;;  %v1221_v30 = vld [vmem:[#allocation2 + $0x358] sm:$0xff]  ;;  %v1156_v57 = vld [vmem:[#allocation2 + $0x150] sm:$0xff] }
 0x1d5   :  { %1261 = vmatpush1.bf16.msra.mxu1 %v1132_v5  ;;  %v1220_v5 = vld [vmem:[#allocation2 + $0x350] sm:$0xff] }
 0x1d6   :  { %1347 = vmatpush1.bf16.msra.mxu0 %v1196_v8  ;;  %1262 = vmatprep.subr.bf16.mxu1 %v1135_v28  ;;  %v1159_v8 = vld [vmem:[#allocation2 + $0x168] sm:$0xff] }
 0x1d7   :  { %1348 = vmatprep.subr.bf16.mxu0 %v1199_v29  ;;  %v1223_v28 = vld [vmem:[#allocation2 + $0x368] sm:$0xff]  ;;  %v1158_v29 = vld [vmem:[#allocation2 + $0x160] sm:$0xff] }
 0x1d9   :  { %1263 = vmatpush1.bf16.msra.mxu1 %v1134_v7  ;;  %v1222_v7 = vld [vmem:[#allocation2 + $0x360] sm:$0xff] }
 0x1da   :  { %1349 = vmatpush1.bf16.msra.mxu0 %v1198_v10  ;;  %1264 = vmatprep.subr.bf16.mxu1 %v1137_v32  ;;  %v1161_v10 = vld [vmem:[#allocation2 + $0x178] sm:$0xff] }
 0x1db   :  { %1350 = vmatprep.subr.bf16.mxu0 %v1201_v34  ;;  %v1225_v32 = vld [vmem:[#allocation2 + $0x378] sm:$0xff]  ;;  %v1160_v34 = vld [vmem:[#allocation2 + $0x170] sm:$0xff] }
 0x1dd   :  { %1265 = vmatpush1.bf16.msra.mxu1 %v1136_v49  ;;  %v1224_v49 = vld [vmem:[#allocation2 + $0x370] sm:$0xff] }
 0x1de   :  { %1351 = vmatpush1.bf16.msra.mxu0 %v1200_v51  ;;  %1266 = vmatprep.subr.bf16.mxu1 %v1139_v35  ;;  %v1163_v51 = vld [vmem:[#allocation2 + $0x188] sm:$0xff] }
 0x1df   :  { %1352 = vmatprep.subr.bf16.mxu0 %v1203_v36  ;;  %v1227_v35 = vld [vmem:[#allocation2 + $0x388] sm:$0xff]  ;;  %v1162_v36 = vld [vmem:[#allocation2 + $0x180] sm:$0xff] }
 0x1e1   :  { %1267 = vmatpush1.bf16.msra.mxu1 %v1138_v50  ;;  %v1226_v50 = vld [vmem:[#allocation2 + $0x380] sm:$0xff] }
 0x1e2   :  { %1353 = vmatpush1.bf16.msra.mxu0 %v1202_v55  ;;  %1268 = vmatprep.subr.bf16.mxu1 %v1141_v37  ;;  %v1165_v55 = vld [vmem:[#allocation2 + $0x198] sm:$0xff] }
 0x1e3   :  { %1354 = vmatprep.subr.bf16.mxu0 %v1205_v11  ;;  %v1229_v37 = vld [vmem:[#allocation2 + $0x398] sm:$0xff]  ;;  %v1164_v11 = vld [vmem:[#allocation2 + $0x190] sm:$0xff] }
 0x1e5   :  { %1269 = vmatpush1.bf16.msra.mxu1 %v1140_v38  ;;  %v1228_v38 = vld [vmem:[#allocation2 + $0x390] sm:$0xff] }
 0x1e6   :  { %1355 = vmatpush1.bf16.msra.mxu0 %v1204_v17  ;;  %1270 = vmatprep.subr.bf16.mxu1 %v1143_v16  ;;  %v1167_v17 = vld [vmem:[#allocation2 + $0x1a8] sm:$0xff] }
 0x1e7   :  { %1356 = vmatprep.subr.bf16.mxu0 %v1207_v40  ;;  %v1231_v16 = vld [vmem:[#allocation2 + $0x3a8] sm:$0xff]  ;;  %v1166_v40 = vld [vmem:[#allocation2 + $0x1a0] sm:$0xff] }
 0x1e9   :  { %1271 = vmatpush1.bf16.msra.mxu1 %v1142_v22  ;;  %v1230_v22 = vld [vmem:[#allocation2 + $0x3a0] sm:$0xff] }
 0x1ea   :  { %1357 = vmatpush1.bf16.msra.mxu0 %v1206_v59  ;;  %1272 = vmatprep.subr.bf16.mxu1 %v1145_v56  ;;  %v1169_v59 = vld [vmem:[#allocation2 + $0x1b8] sm:$0xff] }
 0x1eb   :  { %1358 = vmatprep.subr.bf16.mxu0 %v1209_v47  ;;  %v1233_v56 = vld [vmem:[#allocation2 + $0x3b8] sm:$0xff]  ;;  %v1168_v47 = vld [vmem:[#allocation2 + $0x1b0] sm:$0xff] }
 0x1ed   :  { %1273 = vmatpush1.bf16.msra.mxu1 %v1144_v62  ;;  %v1232_v62 = vld [vmem:[#allocation2 + $0x3b0] sm:$0xff] }
 0x1ee   :  { %1359 = vmatpush1.bf16.msra.mxu0 %v1208_v53  ;;  %1285 = vmatprep.subr.bf16.mxu1 %v1147_v61  ;;  %v1171_v53 = vld [vmem:[#allocation2 + $0x1c8] sm:$0xff] }
 0x1ef   :  { %1371 = vmatprep.subr.bf16.mxu0 %v1211_v63  ;;  %v1235_v61 = vld [vmem:[#allocation2 + $0x3c8] sm:$0xff]  ;;  %v1170_v63 = vld [vmem:[#allocation2 + $0x1c0] sm:$0xff] }
 0x1f0   :  { %1275 = vmatmul.mubr.bf16.vlgmr.msra.gmra.mrb[8].mxu1 %v1106_v43  ;;  %v1234_v43 = vld [vmem:[#allocation2 + $0x3c0] sm:$0xff] }
 0x1f1   :  { %1361 = vmatmul.mubr.bf16.vlgmr.msra.gmra.mrb[8].mxu0 %v1110_v44  ;;  %1286 = vmatpush1.bf16.msra.mxu1 %v1146_v9  ;;  %v1173_v44 = vld [vmem:[#allocation2 + $0x1d8] sm:$0xff] }
 0x1f2   :  { %1372 = vmatpush1.bf16.msra.mxu0 %v1210_v19  ;;  %1287 = vmatprep.subr.bf16.mxu1 %v1149_v26  ;;  %v1237_v9 = vld [vmem:[#allocation2 + $0x3d8] sm:$0xff]  ;;  %v1172_v19 = vld [vmem:[#allocation2 + $0x1d0] sm:$0xff] }
 0x1f3   :  { %1373 = vmatprep.subr.bf16.mxu0 %v1213_v18  ;;  %1317 = vmatprep.mubr.bf16.mxu1 %v1109_v54  ;;  %v1236_v26 = vld [vmem:[#allocation2 + $0x3d0] sm:$0xff]  ;;  %v1175_v18 = vld [vmem:[#allocation2 + $0x1e8] sm:$0xff] }
 0x1f4   :  { %1403 = vmatprep.mubr.bf16.mxu0 %v1113_v60  ;;  %v1239_v54 = vld [vmem:[#allocation2 + $0x3e8] sm:$0xff]  ;;  %v1174_v60 = vld [vmem:[#allocation2 + $0x1e0] sm:$0xff] }
 0x1f5   :  { %1288 = vmatpush1.bf16.msra.mxu1 %v1148_v42  ;;  %v1238_v42 = vld [vmem:[#allocation2 + $0x3e0] sm:$0xff] }
 0x1f6   :  { %1374 = vmatpush1.bf16.msra.mxu0 %v1212_v41  ;;  %1289 = vmatprep.subr.bf16.mxu1 %v1151_v6  ;;  %v1177_v41 = vld [vmem:[#allocation2 + $0x1f8] sm:$0xff] }
 0x1f7   :  { %1375 = vmatprep.subr.bf16.mxu0 %v1215_v15  ;;  %v1241_v6 = vld [vmem:[#allocation2 + $0x3f8] sm:$0xff]  ;;  %v1176_v15 = vld [vmem:[#allocation2 + $0x1f0] sm:$0xff] }
 0x1f9   :  { %1290 = vmatpush1.bf16.msra.mxu1 %v1150_v4  ;;  %v1240_v4 = vld [vmem:[#allocation2 + $0x3f0] sm:$0xff] }
 0x1fa   :  { %1376 = vmatpush1.bf16.msra.mxu0 %v1214_v31  ;;  %1291 = vmatprep.subr.bf16.mxu1 %v1153_v46  ;;  %v1108_v31 = vpack.c.bf16 %v1096_v13, %v1088_v48  ;;  %v1112_v46 = vpack.c.bf16 %v1100_v25, %v1092_v21 }
 0x1fb   :  { %1377 = vmatprep.subr.bf16.mxu0 %v1217_v3 }
 0x1fd   :  { %1292 = vmatpush1.bf16.msra.mxu1 %v1152_v12 }
 0x1fe   :  { %1378 = vmatpush1.bf16.msra.mxu0 %v1216_v23  ;;  %1293 = vmatprep.subr.bf16.mxu1 %v1155_v24 }
 0x1ff   :  { %1379 = vmatprep.subr.bf16.mxu0 %v1219_v14 }
 0x201   :  { %1294 = vmatpush1.bf16.msra.mxu1 %v1154_v20 }
 0x202   :  { %1380 = vmatpush1.bf16.msra.mxu0 %v1218_v27  ;;  %1295 = vmatprep.subr.bf16.mxu1 %v1157_v33 }
 0x203   :  { %1381 = vmatprep.subr.bf16.mxu0 %v1221_v30 }
 0x205   :  { %1296 = vmatpush1.bf16.msra.mxu1 %v1156_v57 }
 0x206   :  { %1382 = vmatpush1.bf16.msra.mxu0 %v1220_v5  ;;  %1297 = vmatprep.subr.bf16.mxu1 %v1159_v8 }
 0x207   :  { %1383 = vmatprep.subr.bf16.mxu0 %v1223_v28 }
 0x209   :  { %1298 = vmatpush1.bf16.msra.mxu1 %v1158_v29 }
 0x20a   :  { %1384 = vmatpush1.bf16.msra.mxu0 %v1222_v7  ;;  %1299 = vmatprep.subr.bf16.mxu1 %v1161_v10 }
 0x20b   :  { %1385 = vmatprep.subr.bf16.mxu0 %v1225_v32 }
 0x20d   :  { %1300 = vmatpush1.bf16.msra.mxu1 %v1160_v34 }
 0x20e   :  { %1386 = vmatpush1.bf16.msra.mxu0 %v1224_v49  ;;  %1301 = vmatprep.subr.bf16.mxu1 %v1163_v51 }
 0x20f   :  { %1387 = vmatprep.subr.bf16.mxu0 %v1227_v35 }
 0x211   :  { %1302 = vmatpush1.bf16.msra.mxu1 %v1162_v36 }
 0x212   :  { %1388 = vmatpush1.bf16.msra.mxu0 %v1226_v50  ;;  %1303 = vmatprep.subr.bf16.mxu1 %v1165_v55 }
 0x213   :  { %1389 = vmatprep.subr.bf16.mxu0 %v1229_v37 }
 0x215   :  { %1304 = vmatpush1.bf16.msra.mxu1 %v1164_v11 }
 0x216   :  { %1390 = vmatpush1.bf16.msra.mxu0 %v1228_v38  ;;  %1305 = vmatprep.subr.bf16.mxu1 %v1167_v17 }
 0x217   :  { %1391 = vmatprep.subr.bf16.mxu0 %v1231_v16 }
 0x219   :  { %1306 = vmatpush1.bf16.msra.mxu1 %v1166_v40 }
 0x21a   :  { %1392 = vmatpush1.bf16.msra.mxu0 %v1230_v22  ;;  %1307 = vmatprep.subr.bf16.mxu1 %v1169_v59 }
 0x21b   :  { %1393 = vmatprep.subr.bf16.mxu0 %v1233_v56 }
 0x21d   :  { %1308 = vmatpush1.bf16.msra.mxu1 %v1168_v47 }
 0x21e   :  { %1394 = vmatpush1.bf16.msra.mxu0 %v1232_v62  ;;  %1309 = vmatprep.subr.bf16.mxu1 %v1171_v53 }
 0x21f   :  { %1395 = vmatprep.subr.bf16.mxu0 %v1235_v61 }
 0x221   :  { %1310 = vmatpush1.bf16.msra.mxu1 %v1170_v63 }
 0x222   :  { %1396 = vmatpush1.bf16.msra.mxu0 %v1234_v43  ;;  %1311 = vmatprep.subr.bf16.mxu1 %v1173_v44 }
 0x223   :  { %1397 = vmatprep.subr.bf16.mxu0 %v1237_v9 }
 0x225   :  { %1312 = vmatpush1.bf16.msra.mxu1 %v1172_v19 }
 0x226   :  { %1398 = vmatpush1.bf16.msra.mxu0 %v1236_v26  ;;  %1313 = vmatprep.subr.bf16.mxu1 %v1175_v18 }
 0x227   :  { %1399 = vmatprep.subr.bf16.mxu0 %v1239_v54 }
 0x229   :  { %1314 = vmatpush1.bf16.msra.mxu1 %v1174_v60 }
 0x22a   :  { %1400 = vmatpush1.bf16.msra.mxu0 %v1238_v42  ;;  %1315 = vmatprep.subr.bf16.mxu1 %v1177_v41 }
 0x22b   :  { %1401 = vmatprep.subr.bf16.mxu0 %v1241_v6 }
 0x22d   :  { %1316 = vmatpush1.bf16.msra.mxu1 %v1176_v15 }
 0x22e   :  { %1402 = vmatpush1.bf16.msra.mxu0 %v1240_v4 }
 0x230   :  { %1318 = vmatmul.mubr.bf16.vlgmr.msra.gmra.mrb[8].mxu1 %v1108_v31 }
 0x231   :  { %1404 = vmatmul.mubr.bf16.vlgmr.msra.gmra.mrb[8].mxu0 %v1112_v46  ;;  %v1456_v46 = vld [vmem:[%s2159_s5] ss:$2 sm:$0x3] }
 0x303   :  { %v1319_v3 = vpop.f32.mrb[8].mxu1 }
 0x304   :  { %v1405_v12 = vpop.f32.mrb[8].mxu0  ;;  %v1321_v24 = vpop.f32.mrb[9].mxu1 }
 0x305   :  { %v2108_v23 = vadd.f32 %v1405_v12, %v1319_v3  ;;  %v1407_v14 = vpop.f32.mrb[9].mxu0  ;;  %v1323_v58 = vpop.f32.mrb[10].mxu1 }
 0x306   :  { %v2110_v20 = vadd.f32 %v1407_v14, %v1321_v24  ;;  %v1409_v45 = vpop.f32.mrb[10].mxu0  ;;  %v1325_v1 = vpop.f32.mrb[11].mxu1 }
 0x307   :  { %v2112_v48 = vadd.f32 %v1409_v45, %v1323_v58  ;;  %v1411_v13 = vpop.f32.mrb[11].mxu0  ;;  %v1430_v21 = vmul.f32 %v2108_v23, %v2108_v23 }
 0x308   :  { %v1649_v2 = vadd.f32 %v1411_v13, %v1325_v1  ;;  %v1431_v33 = vmul.f32 %v2110_v20, %v2110_v20 }
 0x309   :  { %v1414_v25 = vadd.f32 %v2112_v48, %v2108_v23  ;;  %v1432_v27 = vmul.f32 %v2112_v48, %v2112_v48 }
 0x30a   :  { %v1421_v30 = vadd.f32 %v1649_v2, %v2110_v20  ;;  %v1433_v57 = vmul.f32 %v1649_v2, %v1649_v2 }
 0x30b   :  { %v1415_v5 = vrot.slane %v1414_v25, 4  ;;  %v1434_v8 = vadd.f32 %v1432_v27, %v1430_v21 }
 0x30c   :  { %v1422_v28 = vrot.slane %v1421_v30, 4  ;;  %v1441_v29 = vadd.f32 %v1433_v57, %v1431_v33 }
 0x30d   :  { %v1416_v7 = vadd.f32 %v1415_v5, %v1414_v25  ;;  %v1435_v10 = vrot.slane %v1434_v8, 4 }
 0x30e   :  { %v1423_v32 = vadd.f32 %v1422_v28, %v1421_v30  ;;  %v1442_v34 = vrot.slane %v1441_v29, 4  ;;  %v1644_v30 = vld [vmem:[%s2159_s5 + $0x1] ss:$2 sm:$0x3] }
 0x30f   :  { %v1417_v49 = vrot.slane %v1416_v7, 2  ;;  %v1436_v51 = vadd.f32 %v1435_v10, %v1434_v8 }
 0x310   :  { %v1424_v35 = vrot.slane %v1423_v32, 2  ;;  %v1443_v36 = vadd.f32 %v1442_v34, %v1441_v29 }
 0x311   :  { %v1418_v50 = vadd.f32 %v1417_v49, %v1416_v7  ;;  %v1437_v55 = vrot.slane %v1436_v51, 2 }
 0x312   :  { %v1425_v37 = vadd.f32 %v1424_v35, %v1423_v32  ;;  %v1444_v11 = vrot.slane %v1443_v36, 2 }
 0x313   :  { %v1419_v38 = vrot.slane %v1418_v50, 1  ;;  %v1438_v17 = vadd.f32 %v1437_v55, %v1436_v51 }
 0x314   :  { %v1426_v16 = vrot.slane %v1425_v37, 1  ;;  %v1445_v40 = vadd.f32 %v1444_v11, %v1443_v36 }
 0x315   :  { %v1420_v22 = vadd.f32 %v1419_v38, %v1418_v50  ;;  %v1439_v59 = vrot.slane %v1438_v17, 1 }
 0x316   :  { %v1427_v56 = vadd.f32 %v1426_v16, %v1425_v37  ;;  %v1446_v47 = vrot.slane %v1445_v40, 1 }
 0x317   :  { %v1428_v62 = vmul.f32 0.0625, %v1420_v22  ;;  %v1440_v53 = vadd.f32 %v1439_v59, %v1438_v17 }
 0x318   :  { %v1429_v61 = vmul.f32 0.0625, %v1427_v56  ;;  %v1447_v63 = vadd.f32 %v1446_v47, %v1445_v40 }
 0x319   :  { %v1448_v43 = vmul.f32 0.0625, %v1440_v53  ;;  %v1450_v44 = vmul.f32 %v1428_v62, %v1428_v62 }
 0x31a   :  { %v1449_v9 = vmul.f32 0.0625, %v1447_v63  ;;  %v1451_v19 = vmul.f32 %v1429_v61, %v1429_v61 }
 0x31b   :  { %v1452_v26 = vsub.f32 %v1448_v43, %v1450_v44 }
 0x31c   :  { %v1453_v18 = vsub.f32 %v1449_v9, %v1451_v19 }
 0x31d   :  { %v1454_v54 = vmax.f32 %v1452_v26, 0.0 }
 0x31e   :  { %v1455_v60 = vmax.f32 %v1453_v18, 0.0 }
 0x31f   :  { %v1457_v42 = vadd.f32 1e-05, %v1454_v54 }
 0x320   :  { %v1458_v41 = vadd.f32 1e-05, %v1455_v60 }
 0x321   :  { %1690 = vrsqrt.f32 %v1457_v42 }
 0x322   :  { %1692 = vrsqrt.f32 %v1458_v41 }
 0x32b   :  { %v1691_v6 = vpop.eup %1690 }
 0x32c   :  { %v1693_v15 = vpop.eup %1692 }
 0x32d   :  { %v1463_v4 = vcombine.low %v1691_v6, %v1693_v15 }
 0x32f   :  { %v1470_v31 = vrot.slane %v1463_v4, %v1940_v52 }
 0x331   :  { %v1477_v3 = vrot.slane %v1470_v31, %v1940_v52 }
 0x333   :  { %v1479_v12 = vmul.f32 %v1477_v3, %v1456_v46 }
 0x335   :  { %v1490_v24 = vrot.slane %v1479_v12, %v2007_v0  ;;  %v1486_v14 = vrot.slane %v1479_v12, %v2004_v39 }
 0x337   :  { %v1517_v58 = vmul.f32 %v1649_v2, %v1490_v24  ;;  %v1493_v45 = vmul.f32 %v1486_v14, %v1428_v62  ;;  %v1494_v1 = vmul.f32 %v1490_v24, %v1429_v61  ;;  %v1514_v13 = vmul.f32 %v2108_v23, %v1486_v14  ;;  %v1537_v2 = vld [vmem:[%s2160_s6] sm:$0x3] }
 0x338   :  { %v1515_v21 = vmul.f32 %v2110_v20, %v1490_v24  ;;  %v1516_v25 = vmul.f32 %v2112_v48, %v1486_v14  ;;  %v1542_v48 = vrot.slane %v1537_v2, %v2004_v39  ;;  %v1546_v8 = vrot.slane %v1537_v2, %v2007_v0 }
 0x339   :  { %v1497_v27 = vcombine.low %v1493_v45, %v1494_v1 }
 0x33b   :  { %v1504_v33 = vrot.slane %v1497_v27, %v1940_v52 }
 0x33d   :  { %v1511_v57 = vrot.slane %v1504_v33, %v1940_v52 }
 0x33f   :  { %v1513_v5 = vsub.f32 %v1644_v30, %v1511_v57 }
 0x341   :  { %v1522_v23 = vrot.slane %v1513_v5, %v2004_v39  ;;  %v1526_v20 = vrot.slane %v1513_v5, %v2007_v0  ;;  %v1560_v39 = vstv %s2154_s0 }
 0x343   :  { %v1529_v28 = vadd.f32 %v1522_v23, %v1514_v13  ;;  %v1530_v29 = vadd.f32 %v1526_v20, %v1515_v21  ;;  %v1531_v7 = vadd.f32 %v1522_v23, %v1516_v25  ;;  %v1532_v10 = vadd.f32 %v1526_v20, %v1517_v58 }
 0x345   :  { %v1533_v32 = vmax.f32 %v1529_v28, 0.0  ;;  %v1534_v34 = vmax.f32 %v1530_v29, 0.0  ;;  %v1535_v52 = vmax.f32 %v1531_v7, 0.0  ;;  %v1536_v49 = vmax.f32 %v1532_v10, 0.0 }
 0x347   :  { %v1549_v51 = vmul.f32 %v1542_v48, %v1533_v32  ;;  %v1550_v35 = vmul.f32 %v1546_v8, %v1534_v34  ;;  %v1551_v36 = vmul.f32 %v1542_v48, %v1535_v52  ;;  %v1552_v50 = vmul.f32 %v1546_v8, %v1536_v49 }
 0x349   :  { %v1553_v55 = vadd.f32 %v1550_v35, %v1549_v51  ;;  %v1556_v37 = vadd.f32 %v1552_v50, %v1551_v36 }
 0x34b   :  { %1554 = vadd.xlane.f32.xlu0 %v1553_v55 }
 0x34f   :  { %1557 = vadd.xlane.f32.xlu0 %v1556_v37 }
 0x3d8   :  { %v1555_v0 = vpop.xlane.xlu0 %1554 }
 0x3d9   :  { %v1561_v11 = vadd.f32 %v1560_v39, %v1555_v0 }
 0x3db   :  { %1564 = vst.msk [vmem:[%s2161_s7] sm:$0xff] %vm1563_vm0, %v1561_v11 }
 0x3dc   :  { %v1558_v38 = vpop.xlane.xlu0 %1557 }
 0x3dd   :  { %v1562_v17 = vadd.f32 %v1560_v39, %v1558_v38 }
 0x3df   :  { %1565 = vst.msk [vmem:[%s2161_s7 + $0x8] sm:$0xff] %vm1563_vm0, %v1562_v17 }
 0x3e0   :  { %1570 = vsyncpa [#allocation6], 1 }
 0x3e1   :  { %1571 = vsyncpa [#allocation8], 1 }
 0x3e2   :  { %1572 = vsyncmov [#allocation3] }
 0x3e5   :  { %s1573_s13 = vpop.sfrf %1572 }
 0x3e6   :  { %p1645_p10 = scmp.ne.s32.totalorder %s1573_s13, 0 }
 0x3e8   :  { %1577 = shalt.err (%p1645_p10)  }

</bundles_post_ra>
